<compile_context>
chip_gen: v7x
topology: tpu7x:2x2x1
jax: 0.10.0
libtpu: 0.0.40
codegen_flags: <defaults>
</compile_context>

<pallas_src>
import functools

import jax
import jax.numpy as jnp
from jax.experimental import pallas as pl
from jax.experimental.pallas import tpu as pltpu

IN_FEATURES = 4096
OUT_FEATURES = 1000
LANE = 128


def _round_up(x, m):
    return (x + m - 1) // m * m


def _linear_kernel(x_ref, w_ref, b_ref, o_ref):
    """One (N-tile, K-tile) step of y = x @ W_t + b.

    The output block is resident across the K (reduction) axis, so we
    accumulate straight into o_ref (f32) and add the bias on the last step.
    """
    k = pl.program_id(1)

    @pl.when(k == 0)
    def _():
        o_ref[...] = jnp.zeros_like(o_ref)

    o_ref[...] += jnp.dot(
        x_ref[...], w_ref[...], preferred_element_type=jnp.float32
    )

    @pl.when(k == pl.num_programs(1) - 1)
    def _():
        o_ref[...] += b_ref[...]


def prepare_params(weight, bias):
    """One-time (outside jit) param prep: transpose, pad N to 1024, cast to bf16.

    weight: (1000, 4096)  PyTorch nn.Linear layout
    bias:   (1000,)
    returns w_t: (4096, 1024) bf16, b: (1, 1024) f32
    """
    n, k = weight.shape
    n_pad = _round_up(n, LANE)
    w_t = jnp.zeros((k, n_pad), jnp.bfloat16)
    w_t = w_t.at[:, :n].set(weight.T.astype(jnp.bfloat16))
    b = jnp.zeros((1, n_pad), jnp.float32)
    b = b.at[:, :n].set(bias.astype(jnp.float32))
    return w_t, b


@functools.partial(jax.jit, static_argnames=("out_features", "tk", "tn"))
def f8_forward(x, w_t, b, *, out_features=OUT_FEATURES, tk=2048, tn=512):
    """F8.forward: nn.Linear(4096, 1000).

    x:   (B, 4096)
    w_t: (4096, N_pad) bf16 (from prepare_params)
    b:   (1, N_pad) f32    (from prepare_params)
    returns (B, 1000) in x.dtype
    """
    B, K = x.shape
    Kw, Np = w_t.shape
    assert K == Kw
    assert K % tk == 0 and Np % tn == 0

    x_bf = x.astype(jnp.bfloat16)

    grid = (Np // tn, K // tk)  # (parallel N split, reduction K last)
    out = pl.pallas_call(
        _linear_kernel,
        out_shape=jax.ShapeDtypeStruct((B, Np), jnp.float32),
        grid_spec=pltpu.PrefetchScalarGridSpec(
            num_scalar_prefetch=0,
            grid=grid,
            in_specs=[
                pl.BlockSpec((B, tk), lambda j, k: (0, k)),   # x K-tile
                pl.BlockSpec((tk, tn), lambda j, k: (k, j)),  # weight tile
                pl.BlockSpec((1, tn), lambda j, k: (0, j)),   # bias N-slice
            ],
            out_specs=pl.BlockSpec((B, tn), lambda j, k: (0, j)),
        ),
        compiler_params=pltpu.CompilerParams(
            dimension_semantics=("parallel", "arbitrary"),
        ),
    )(x_bf, w_t, b)

    return out[:, :out_features].astype(x.dtype)


def init_params(key):
    """Deterministic init matching PyTorch nn.Linear default (uniform +-1/sqrt(fan_in))."""
    kw, kb = jax.random.split(key)
    bound = 1.0 / (IN_FEATURES ** 0.5)
    weight = jax.random.uniform(
        kw, (OUT_FEATURES, IN_FEATURES), jnp.float32, minval=-bound, maxval=bound
    )
    bias = jax.random.uniform(
        kb, (OUT_FEATURES,), jnp.float32, minval=-bound, maxval=bound
    )
    return weight, bias


if __name__ == "__main__":
    key = jax.random.PRNGKey(0)
    kx, kp = jax.random.split(key)

    B = 8  # small batch
    x = jax.random.normal(kx, (B, IN_FEATURES), jnp.float32)
    weight, bias = init_params(kp)

    # One-time param prep (transpose + bf16 cast + N padding) outside jit.
    w_t, b_row = prepare_params(weight, bias)

    out = f8_forward(x, w_t, b_row)
    out = jax.block_until_ready(out)

    # sanity check vs plain-JAX f32 reference (bf16 weight/input => looser tol)
    ref = x @ weight.T + bias
    assert out.shape == (B, OUT_FEATURES)
    assert jnp.allclose(out, ref, atol=3e-2, rtol=3e-2)

    print("KERNEL_OK")
</pallas_src>

<mosaic_0001>
module attributes {stable_mosaic.version = 11 : i64} {
  func.func @_linear_kernel(%arg0: i32, %arg1: i32, %arg2: memref<8x2048xbf16, #tpu.memory_space<vmem>>, %arg3: memref<2048x512xbf16, #tpu.memory_space<vmem>>, %arg4: memref<1x512xf32, #tpu.memory_space<vmem>>, %arg5: memref<8x512xf32, #tpu.memory_space<vmem>>) attributes {dimension_semantics = [#tpu.dimension_semantics<parallel>, #tpu.dimension_semantics<arbitrary>], iteration_bounds = array<i64: 2, 2>, scalar_prefetch = 0 : i64, scratch_operands = 0 : i64, tpu.core_type = #tpu.core_type<tc>, window_params = [{transform_indices = @transform_0, window_bounds = array<i64: 8, 2048>}, {transform_indices = @transform_1, window_bounds = array<i64: 2048, 512>}, {transform_indices = @transform_2, window_bounds = array<i64: 1, 512>}, {transform_indices = @transform_3, window_bounds = array<i64: 8, 512>}]} {
    %c0_i32 = arith.constant 0 : i32
    %0 = arith.cmpi eq, %arg1, %c0_i32 : i32
    %1 = arith.extui %0 : i1 to i32
    %c0_i32_0 = arith.constant 0 : i32
    %2 = arith.cmpi ne, %1, %c0_i32_0 : i32
    scf.if %2 {
      %cst_9 = arith.constant 0.000000e+00 : f32
      %12 = vector.broadcast %cst_9 : f32 to vector<8x512xf32>
      %c0_10 = arith.constant 0 : index
      %c0_11 = arith.constant 0 : index
      %13 = vector.load %arg5[%c0_10, %c0_11] : memref<8x512xf32, #tpu.memory_space<vmem>>, vector<8x512xf32>
      tpu.vector_store %arg5[%c0_10, %c0_11], %12 {strides = array<i32>} : memref<8x512xf32, #tpu.memory_space<vmem>>, vector<8x512xf32>,
    } else {
    }
    %c0 = arith.constant 0 : index
    %c0_1 = arith.constant 0 : index
    %3 = vector.load %arg5[%c0, %c0_1] : memref<8x512xf32, #tpu.memory_space<vmem>>, vector<8x512xf32>
    %c0_2 = arith.constant 0 : index
    %c0_3 = arith.constant 0 : index
    %4 = vector.load %arg2[%c0_2, %c0_3] : memref<8x2048xbf16, #tpu.memory_space<vmem>>, vector<8x2048xbf16>
    %c0_4 = arith.constant 0 : index
    %c0_5 = arith.constant 0 : index
    %5 = vector.load %arg3[%c0_4, %c0_5] : memref<2048x512xbf16, #tpu.memory_space<vmem>>, vector<2048x512xbf16>
    %cst = arith.constant dense<0.000000e+00> : vector<8x512xf32>
    %6 = tpu.matmul %4, %5, %cst {dimension_numbers = #tpu.dot_dimension_numbers<[1], [0], [0], [1], [0, 0, 1, 1], [], []>} : vector<8x2048xbf16>, vector<2048x512xbf16>, vector<8x512xf32> -> vector<8x512xf32>
    %7 = arith.addf %3, %6 : vector<8x512xf32>
    %c0_6 = arith.constant 0 : index
    %c0_7 = arith.constant 0 : index
    %8 = vector.load %arg5[%c0_6, %c0_7] : memref<8x512xf32, #tpu.memory_space<vmem>>, vector<8x512xf32>
    tpu.vector_store %arg5[%c0_6, %c0_7], %7 {strides = array<i32>} : memref<8x512xf32, #tpu.memory_space<vmem>>, vector<8x512xf32>,
    %c1_i32 = arith.constant 1 : i32
    %9 = arith.cmpi eq, %arg1, %c1_i32 : i32
    %10 = arith.extui %9 : i1 to i32
    %c0_i32_8 = arith.constant 0 : i32
    %11 = arith.cmpi ne, %10, %c0_i32_8 : i32
    scf.if %11 {
      %c0_9 = arith.constant 0 : index
      %c0_10 = arith.constant 0 : index
      %12 = vector.load %arg5[%c0_9, %c0_10] : memref<8x512xf32, #tpu.memory_space<vmem>>, vector<8x512xf32>
      %c0_11 = arith.constant 0 : index
      %c0_12 = arith.constant 0 : index
      %13 = vector.load %arg4[%c0_11, %c0_12] : memref<1x512xf32, #tpu.memory_space<vmem>>, vector<1x512xf32>
      %14 = vector.broadcast %13 : vector<1x512xf32> to vector<8x512xf32>
      %15 = arith.addf %12, %14 : vector<8x512xf32>
      %c0_13 = arith.constant 0 : index
      %c0_14 = arith.constant 0 : index
      %16 = vector.load %arg5[%c0_13, %c0_14] : memref<8x512xf32, #tpu.memory_space<vmem>>, vector<8x512xf32>
      tpu.vector_store %arg5[%c0_13, %c0_14], %15 {strides = array<i32>} : memref<8x512xf32, #tpu.memory_space<vmem>>, vector<8x512xf32>,
    } else {
    }
    return
  }
  func.func @transform_0(%arg0: i32, %arg1: i32) -> (i32, i32) {
    %c0_i32 = arith.constant 0 : i32
    %c0_i32_0 = arith.constant 0 : i32
    return %c0_i32, %arg1 : i32, i32
  }
  func.func @transform_1(%arg0: i32, %arg1: i32) -> (i32, i32) {
    %c0_i32 = arith.constant 0 : i32
    return %arg1, %arg0 : i32, i32
  }
  func.func @transform_2(%arg0: i32, %arg1: i32) -> (i32, i32) {
    %c0_i32 = arith.constant 0 : i32
    %c0_i32_0 = arith.constant 0 : i32
    return %c0_i32, %arg0 : i32, i32
  }
  func.func @transform_3(%arg0: i32, %arg1: i32) -> (i32, i32) {
    %c0_i32 = arith.constant 0 : i32
    %c0_i32_0 = arith.constant 0 : i32
    return %c0_i32, %arg0 : i32, i32
  }
}

</mosaic_0001>

<bundles_post_ra>
// kernel: f8_forward.1
= control target key start
LH: loop header
LB: loop body
LE: loop exit
PB: predicated region body
PF: predicated region fallthrough
CT: control target
= control target key end

     0   :  { %s6886_s0 = inlined_call_operand.vmem [shape: bf16[8,4096], index: 0, kind: input, shape index: {}]   ;;  %s6887_s1 = inlined_call_operand.hbm [shape: bf16[4096,1024], index: 1, kind: input, shape index: {}]   ;;  %s6888_s2 = inlined_call_operand.hbm [shape: f32[1,1024], index: 2, kind: input, shape index: {}]   ;;  %s6889_s3 = inlined_call_operand.hbm [shape: f32[8,1024], index: 3, kind: output, shape index: {}]  }
   0x1   :  { %6897 = sst [smem:[#allocation13_spill]] %s6887_s1 }
   0x2   :  { %8 = vsyncpa [#allocation3], 0 }
   0x3   :  { %10 = vsyncpa [#allocation3 + $0x1], 0 }
   0x4   :  { %11 = vsyncpa [#allocation6], 0 }
   0x5   :  { %13 = vsyncpa [#allocation6 + $0x1], 0 }
   0x6   :  { %14 = vsyncpa [#allocation4], 0 }
   0x7   :  { %16 = vsyncpa [#allocation4 + $0x1], 0  ;;  %s5920_s12 = smov 0   ;;  %s5922_s13 = smov 0  }
   0x8   :  { %s5924_s14 = smov 0   ;;  %s5926_s15 = smov 0  }
   0x9   :  { %s5928_s16 = smov 0   ;;  %s5930_s17 = smov 0  }
   0xa   :  { %s5932_s18 = smov 0   ;;  %s5934_s19 = smov 0  }
   0xb   :  { %s5936_s20 = smov 0   ;;  %s5938_s21 = smov 0  }
   0xc   :  { %s5940_s22 = smov 0  }
   0xd LB: > { %s31_s23 = sadd.s32 1, %s5883_s20  ;;  %p76_p1 = scmp.ne.s32.totalorder %s5871_s17, %s5867_s16  ;;  %s5891_s22 = sphi %s5940_s22, %s22_s22   ;;  %s5887_s21 = sphi %s5938_s21, %s6927_s21   ;;  %s5883_s20 = sphi %s5936_s20, %s6926_s20   ;;  %s5879_s19 = sphi %s5934_s19, %s6925_s19   ;;  %s5875_s18 = sphi %s5932_s18, %s6924_s18   ;;  %s5871_s17 = sphi %s5930_s17, %s6923_s17   ;;  %s5867_s16 = sphi %s5928_s16, %s6922_s16   ;;  %s5863_s15 = sphi %s5926_s15, %s6921_s15   ;;  %s5859_s14 = sphi %s5924_s14, %s6920_s14   ;;  %s5855_s13 = sphi %s5922_s13, %s6919_s13   ;;  %s5851_s12 = sphi %s5920_s12, %s6918_s12  }
   0xe   : > { %p5976_p0 = scmp.ge.s32.totalorder %s31_s23, 2  ;;  %p6891_p2 = scmp.eq.s32.totalorder %s5891_s22, 0 }
   0xf   : > { %s69_s25 = sadd.s32 1, %s5871_s17  ;;  %p6890_p4 = scmp.lt.s32.totalorder %s5891_s22, 4 }
  0x10   : > { %s6929_s23 = smov (%p5976_p0, %s31_s23), 0  ;;  %p78_p3 = por %p6891_p2, %p76_p1 }
  0x11   : > { %6899 = sst [smem:[#allocation11_spill]] %s6929_s23  ;;  %s167_s26 = sand.u32 1, %s5871_s17  }
  0x12   : > { %s4258_s27 = sshll.u32 %s167_s26, 12  ;;  %s4260_s28 = sshll.u32 %s5887_s21, 2 }
  0x13   : > { %s4807_s29 = sshll.u32 %s5883_s20, 11  ;;  %s171_s30 = scalar_lea.vmem [#allocation2], %s4258_s27 }
  0x14   : > { %s181_s4 = sshll.u32 %s171_s30, 4  ;;  %s178_s5 = sadd.s32 %s4807_s29, %s4260_s28  ;;  %s5994_s4 = int_to_ptr.vmem [resolvable:$true] %s181_s4 }
  0x15   : > { %s4262_s6 = sshll.u32 %s178_s5, 6  ;;  %p5998_p5 = pnand %p6890_p4, %p78_p3 }
  0x16   : > { %s6901_s1 = sld [smem:[#allocation13_spill]]  ;;  %s6008_s11 = scalar_lea.sflag [#allocation3], %s167_s26 }
  0x17   : > { %p5707_p8 = pneg %p5998_p5 }
  0x1c   : > { %s6005_s10 = scalar_lea.hbm %s6901_s1, %s4262_s6  ;;  %s5710_s30 = scalar_lea.hbm %s6901_s1, 262144 }
  0x1d   : > { %s5705_s27 = scalar_lea.hbm %s6005_s10, 65536  ;;  %p5711_p11 = scmp.lt.u32.totalorder %s6005_s10, %s6901_s1 }
  0x1e   : > { %p5706_p7 = scmp.ne.s32.totalorder %s6005_s10, %s5705_s27  ;;  %p5712_p12 = scmp.lt.u32.totalorder %s5710_s30, %s5705_s27 }
  0x1f   : > { %p5714_p1 = scmp.lt.u32.totalorder %s5705_s27, %s6005_s10 }
  0x20   : > { %p5708_p9 = pnand %p5707_p8, %p5706_p7  ;;  %p5713_p13 = por %p5712_p12, %p5711_p11 }
  0x22   : > { %p5709_p10 = pneg %p5708_p9  ;;  %p5715_p3 = por %p5714_p1, %p5713_p13 }
  0x24   : > { %p5716_p4 = pnand %p5715_p3, %p5709_p10 }
  0x26   : > { %5719 = shalt.err (!%p5716_p4)
}
  0x27   : > { %s5720_s26 = scalar_lea.vmem %s5994_s4, 65536  ;;  %s5893_s8 = smov [#allocation2]  }
  0x28   : > { %p5721_p7 = scmp.ne.s32.totalorder %s5994_s4, %s5720_s26  ;;  %s5725_s9 = sshll.u32 %s5893_s8, 4  ;;  %s5726_s9 = int_to_ptr.vmem [resolvable:$false] %s5725_s9 }
  0x29   : > { %s5727_s28 = scalar_lea.vmem %s5726_s9, 131072  ;;  %p5728_p6 = scmp.lt.s32.totalorder %s5994_s4, %s5726_s9 }
  0x2a   : > { %p5723_p9 = pnand %p5721_p7, %p5707_p8  ;;  %p5729_p11 = scmp.lt.s32.totalorder %s5727_s28, %s5720_s26 }
  0x2c   : > { %p5724_p2 = pneg %p5723_p9  ;;  %p5730_p12 = por %p5729_p11, %p5728_p6 }
  0x2e   : > { %p5731_p13 = pnand %p5730_p12, %p5724_p2 }
  0x30   : > { %5734 = shalt.err (!%p5731_p13)
}
  0x31   : > { %s5894_s27 = smov 512   ;;  %s5895_s29 = smov 256  }
  0x32   : > { %s5896_s30 = smov 16   ;;  %p208_p2 = scmp.lt.s32.totalorder %s5891_s22, 5 }
  0x33   : > { %4819 = dma.hbm_to_vmem [thread:$0]  (!%p5998_p5), %s6005_s10, 65536, %s5994_s4, %s6008_s11, %s5894_s27, %s5895_s29, %s5896_s30  }
  0x34   : > { %p6902_p4 = scmp.ge.s32.totalorder %s5891_s22, 1  ;;  %s64_s6 = ssub.s32 %s5883_s20, %s6929_s23 }
  0x35   : > { %s4254_s26 = sadd.s32 4294967295, %s5891_s22   ;;  %s34_s8 = sadd.s32 1, %s5887_s21 }
  0x36   : > { %p6039_p6 = pnand %p6902_p4, %p208_p2  ;;  %p82_p8 = scmp.ne.s32.totalorder %s5867_s16, %s5863_s15 }
  0x37   : > { %s6931_s8 = smov (!%p5976_p0, %s34_s8), %s5887_s21  ;;  %s4255_s7 = sadd.s32 4294967294, %s5891_s22  }
  0x38   : > { %p83_p5 = scmp.eq.s32.totalorder %s4254_s26, 0  ;;  %p36_p10 = scmp.ge.s32.totalorder %s6931_s8, 2 }
  0x39   : > { %s95_s4 = sadd.s32 1, %s5859_s14  ;;  %p108_p3 = scmp.ne.s32.totalorder %s5855_s13, %s5851_s12 }
  0x3a   : > { %p6054_p1 = por %p83_p5, %p82_p8  ;;  %s6933_s8 = smov (%p36_p10, %s6931_s8), 0 }
  0x3b   : > { %6905 = sst [smem:[#allocation12_spill]] %s6933_s8  ;;  %p102_p0 = scmp.ne.s32.totalorder %s5859_s14, %s5855_s13 }
  0x3c   : > { %s6904_s10 = scalar_select %p6054_p1, 1, 0 }
  0x3d   : > { %p6067_p7 = por %p108_p3, %p83_p5  ;;  %s65_s24 = ssub.s32 %s5887_s21, %s6933_s8 }
  0x3e   : > { %p132_p9 = scmp.eq.s32.totalorder %s4254_s26, 3  ;;  %s66_s11 = sor.u32 %s65_s24, %s64_s6 }
  0x3f   : > { %s6906_s15 = scalar_select %p6067_p7, 1, 0 }
  0x40   : > { %p93_p11 = scmp.eq.s32.totalorder %s65_s24, 0  ;;  %p67_p12 = scmp.eq.s32.totalorder %s66_s11, 0 }
  0x41   : > { %p6073_p13 = por %p132_p9, %p102_p0  ;;  %p138_p2 = scmp.eq.s32.totalorder %s4255_s7, 3 }
  0x42   : > { %s6078_s28 = scalar_select %p93_p11, %s5859_s14, %s95_s4  }
  0x43   : > { %s6907_s9 = scalar_select %p6073_p13, 1, 0 }
  0x44   : > { %s6083_s27 = scalar_select %p67_p12, %s5871_s17, %s69_s25  }
  0x45   : > { %s191_s29 = sand.u32 1, %s5859_s14   ;;  %p6908_p4 = scmp.eq.s32.totalorder %s5891_s22, 0 }
  0x46   : > { %s4263_s30 = sshll.u32 %s191_s29, 2  ;;  %p6091_p5 = por %p138_p2, %p108_p3 }
  0x47   : > { %p104_p8 = por %p102_p0, %p6908_p4  ;;  %s4808_s26 = sshll.u32 %s5887_s21, 6 }
  0x48   : > { %s6909_s6 = scalar_select %p6091_p5, 1, 0 }
  0x49   : > { %s195_s24 = scalar_lea.vmem [#allocation5], %s4263_s30  ;;  %s6099_s4 = scalar_lea.hbm %s6888_s2, %s4808_s26 }
  0x4a   : > { %s203_s11 = sshll.u32 %s195_s24, 4  ;;  %p6910_p10 = scmp.lt.s32.totalorder %s5891_s22, 4  ;;  %s6101_s11 = int_to_ptr.vmem [resolvable:$true] %s203_s11 }
  0x4b   : > { %s192_s7 = scalar_lea.sflag [#allocation6], %s191_s29  ;;  %s5735_s30 = scalar_lea.hbm %s6099_s4, 64 }
  0x4c   : > { %p6105_p0 = pnand %p6910_p10, %p104_p8  ;;  %p5736_p3 = scmp.ne.s32.totalorder %s6099_s4, %s5735_s30 }
  0x4d   : > { %s5740_s26 = scalar_lea.hbm %s6888_s2, 128  ;;  %p5741_p2 = scmp.lt.u32.totalorder %s6099_s4, %s6888_s2 }
  0x4e   : > { %p5737_p9 = pneg %p6105_p0  ;;  %p5742_p4 = scmp.lt.u32.totalorder %s5740_s26, %s5735_s30 }
  0x4f   : > { %p5744_p10 = scmp.lt.u32.totalorder %s5735_s30, %s6099_s4 }
  0x50   : > { %p5738_p11 = pnand %p5737_p9, %p5736_p3  ;;  %p5743_p8 = por %p5742_p4, %p5741_p2 }
  0x52   : > { %p5739_p12 = pneg %p5738_p11  ;;  %p5745_p5 = por %p5744_p10, %p5743_p8 }
  0x54   : > { %p5746_p13 = pnand %p5745_p5, %p5739_p12 }
  0x56   : > { %5749 = shalt.err (!%p5746_p13)
}
  0x57   : > { %s5750_s29 = scalar_lea.vmem %s6101_s11, 64  ;;  %s5897_s1 = smov [#allocation5]  }
  0x58   : > { %p5751_p3 = scmp.ne.s32.totalorder %s6101_s11, %s5750_s29  ;;  %s5755_s8 = sshll.u32 %s5897_s1, 4  ;;  %s5756_s8 = int_to_ptr.vmem [resolvable:$false] %s5755_s8 }
  0x59   : > { %s5757_s23 = scalar_lea.vmem %s5756_s8, 128  ;;  %p5758_p1 = scmp.lt.s32.totalorder %s6101_s11, %s5756_s8 }
  0x5a   : > { %p5753_p11 = pnand %p5751_p3, %p5737_p9  ;;  %p5759_p2 = scmp.lt.s32.totalorder %s5757_s23, %s5750_s29 }
  0x5c   : > { %p5754_p7 = pneg %p5753_p11  ;;  %p5760_p4 = por %p5759_p2, %p5758_p1 }
  0x5e   : > { %p5761_p8 = pnand %p5760_p4, %p5754_p7 }
  0x60   : > { %5764 = shalt.err (!%p5761_p8)
}
  0x61   : > { %4822 = dma.hbm_to_vmem [thread:$0]  (!%p6105_p0), %s6099_s4, 64, %s6101_s11, %s192_s7  }
  0x62   : > { %212 = sbr.rel (%p6039_p6) target bundleno = 889 (0x379), region = 32  ;;  %s214_s30 = sand.u32 (!%p6039_p6), 1, %s5867_s16  }
  0x63   : > { %s4267_s26 = sshll.u32 (!%p6039_p6), %s214_s30, 12  ;;  %s215_s24 = scalar_lea.sflag (!%p6039_p6), [#allocation3], %s214_s30 }
  0x64   : > { %s6137_s1 = scalar_lea.vmem (!%p6039_p6), [#allocation2], %s4267_s26  ;;  %p6912_p13 = scmp.ne.s32.totalorder (!%p6039_p6), %s6904_s10, 0 }
  0x69   : > { %5838 = dma.done.wait (%p6912_p13), %s215_s24, 65536  }
  0x6a   : > { %5840 = vsyncadd (%p6912_p13), %s215_s24, 4294901760  ;;  %s6144_s25 = sand.u32 1, %s5855_s13   ;;  %p6913_p6 = scmp.ne.s32.totalorder %s6906_s15, 0 }
  0x6b   : > { %s4268_s5 = sshll.u32 %s6144_s25, 2  ;;  %s224_s11 = scalar_lea.sflag [#allocation6], %s6144_s25 }
  0x6c   : > { %s6148_s4 = scalar_lea.vmem [#allocation5], %s4268_s5 }
  0x6d   : > { %5842 = dma.done.wait (%p6913_p6), %s224_s11, 64  }
  0x6e   : > { %5844 = vsyncadd (%p6913_p6), %s224_s11, 4294967232  ;;  %s4269_s7 = sshll.u32 %s6144_s25, 5  ;;  %s4270_s10 = sshll.u32 %s5875_s18, 4 }
  0x6f   : > { %p261_p1 = scmp.lt.s32.totalorder %s4270_s10, 31  ;;  %s6161_s26 = scalar_lea.vmem [#allocation7], %s4269_s7 }
  0x70   : > { %p4272_p7 = scmp.ne.s32.totalorder %s5875_s18, 0 }
  0x71   : > { %s6935_s10 = smov (!%p261_p1, %s4270_s10), 31  ;;  %v5898_v0 = vmov (!%p4272_p7), 0.0  }
  0x72   : > { %s4271_s29 = sshll.u32 %s6935_s10, 2  ;;  %273 = sbr.rel (%p4272_p7) target bundleno = 121 (0x79), region = 44  ;;  %274 = vst [vmem:[%s6161_s26] sm:$0xff] (!%p4272_p7), %v5898_v0  ;;  %275 = vst [vmem:[%s6161_s26 + $0x8] sm:$0xff] (!%p4272_p7), %v5898_v0 }
  0x73   : > { %s6159_s30 = scalar_lea.vmem %s6886_s0, %s4271_s29  ;;  %276 = vst [vmem:[%s6161_s26 + $0x10] sm:$0xff] (!%p4272_p7), %v5898_v0  ;;  %277 = vst [vmem:[%s6161_s26 + $0x18] sm:$0xff] (!%p4272_p7), %v5898_v0 }
  0x79 PF: > { %v4921_v1 = vld [vmem:[%s6137_s1 + $0x4] ss:$16 sps:$4 sm:$0xff]   ;;  %v4925_v3 = vld [vmem:[%s6137_s1] ss:$16 sps:$4 sm:$0xff]   ;;  %v283_v49 = vld [vmem:[%s6159_s30 + $0x8] sm:$0xff]  ;;  %p4801_p5 = scmp.ne.s32.totalorder %s5875_s18, 1 }
  0x7a   : > { %v4923_v2 = vld [vmem:[%s6137_s1 + $0x204] ss:$16 sps:$4 sm:$0xff]   ;;  %3418 = vmatprep.subr.bf16.mxu0 %v4921_v1  ;;  %v4926_v4 = vld [vmem:[%s6137_s1 + $0x200] ss:$16 sps:$4 sm:$0xff]   ;;  %v6220_v52 = vcombine.high %v283_v49, %v283_v49 }
  0x7b   : > { %3459 = vmatprep.subr.bf16.mxu1 %v4923_v2  ;;  %v4927_v5 = vld [vmem:[%s6137_s1 + $0x24] ss:$16 sps:$4 sm:$0xff]   ;;  %3419 = vmatpush1.bf16.msra.mxu0 %v4925_v3  ;;  %v4931_v7 = vld [vmem:[%s6137_s1 + $0x20] ss:$16 sps:$4 sm:$0xff]  }
  0x7c   : > { %3460 = vmatpush1.bf16.msra.mxu1 %v4926_v4  ;;  %v4929_v6 = vld [vmem:[%s6137_s1 + $0x224] ss:$16 sps:$4 sm:$0xff]   ;;  %3420 = vmatprep.subr.bf16.mxu0 %v4927_v5  ;;  %v4932_v8 = vld [vmem:[%s6137_s1 + $0x220] ss:$16 sps:$4 sm:$0xff]  }
  0x7d   : > { %3461 = vmatprep.subr.bf16.mxu1 %v4929_v6  ;;  %v4933_v9 = vld [vmem:[%s6137_s1 + $0x44] ss:$16 sps:$4 sm:$0xff]   ;;  %v4937_v11 = vld [vmem:[%s6137_s1 + $0x40] ss:$16 sps:$4 sm:$0xff]   ;;  %3491 = vmatprep.mubr.bf16.mxu1 %v6220_v52 }
  0x7e   : > { %v4935_v10 = vld [vmem:[%s6137_s1 + $0x244] ss:$16 sps:$4 sm:$0xff]   ;;  %v4938_v12 = vld [vmem:[%s6137_s1 + $0x240] ss:$16 sps:$4 sm:$0xff]  }
  0x7f   : > { %3421 = vmatpush1.bf16.msra.mxu0 %v4931_v7  ;;  %v4939_v13 = vld [vmem:[%s6137_s1 + $0x64] ss:$16 sps:$4 sm:$0xff]   ;;  %v4943_v15 = vld [vmem:[%s6137_s1 + $0x60] ss:$16 sps:$4 sm:$0xff]  }
  0x80   : > { %3462 = vmatpush1.bf16.msra.mxu1 %v4932_v8  ;;  %3422 = vmatprep.subr.bf16.mxu0 %v4933_v9  ;;  %v4941_v14 = vld [vmem:[%s6137_s1 + $0x264] ss:$16 sps:$4 sm:$0xff]   ;;  %v4944_v16 = vld [vmem:[%s6137_s1 + $0x260] ss:$16 sps:$4 sm:$0xff]   ;;  %v6244_v8 = vcombine.low %v283_v49, %v283_v49 }
  0x81   : > { %3463 = vmatprep.subr.bf16.mxu1 %v4935_v10  ;;  %v4945_v17 = vld [vmem:[%s6137_s1 + $0x84] ss:$16 sps:$4 sm:$0xff]   ;;  %v4949_v19 = vld [vmem:[%s6137_s1 + $0x80] ss:$16 sps:$4 sm:$0xff]  }
  0x82   : > { %v4947_v18 = vld [vmem:[%s6137_s1 + $0x284] ss:$16 sps:$4 sm:$0xff]   ;;  %v4950_v20 = vld [vmem:[%s6137_s1 + $0x280] ss:$16 sps:$4 sm:$0xff]  }
  0x83   : > { %3423 = vmatpush1.bf16.msra.mxu0 %v4937_v11  ;;  %v4951_v21 = vld [vmem:[%s6137_s1 + $0xa4] ss:$16 sps:$4 sm:$0xff]   ;;  %v4955_v23 = vld [vmem:[%s6137_s1 + $0xa0] ss:$16 sps:$4 sm:$0xff]  }
  0x84   : > { %3464 = vmatpush1.bf16.msra.mxu1 %v4938_v12  ;;  %3424 = vmatprep.subr.bf16.mxu0 %v4939_v13  ;;  %v4953_v22 = vld [vmem:[%s6137_s1 + $0x2a4] ss:$16 sps:$4 sm:$0xff]   ;;  %v4956_v24 = vld [vmem:[%s6137_s1 + $0x2a0] ss:$16 sps:$4 sm:$0xff]  }
  0x85   : > { %3465 = vmatprep.subr.bf16.mxu1 %v4941_v14  ;;  %v4957_v25 = vld [vmem:[%s6137_s1 + $0xc4] ss:$16 sps:$4 sm:$0xff]   ;;  %v4961_v27 = vld [vmem:[%s6137_s1 + $0xc0] ss:$16 sps:$4 sm:$0xff]  }
  0x86   : > { %v4959_v26 = vld [vmem:[%s6137_s1 + $0x2c4] ss:$16 sps:$4 sm:$0xff]   ;;  %v4962_v28 = vld [vmem:[%s6137_s1 + $0x2c0] ss:$16 sps:$4 sm:$0xff]  }
  0x87   : > { %3425 = vmatpush1.bf16.msra.mxu0 %v4943_v15  ;;  %v4963_v29 = vld [vmem:[%s6137_s1 + $0xe4] ss:$16 sps:$4 sm:$0xff]   ;;  %v4967_v31 = vld [vmem:[%s6137_s1 + $0xe0] ss:$16 sps:$4 sm:$0xff]  }
  0x88   : > { %3466 = vmatpush1.bf16.msra.mxu1 %v4944_v16  ;;  %3426 = vmatprep.subr.bf16.mxu0 %v4945_v17  ;;  %v4965_v30 = vld [vmem:[%s6137_s1 + $0x2e4] ss:$16 sps:$4 sm:$0xff]   ;;  %v4968_v32 = vld [vmem:[%s6137_s1 + $0x2e0] ss:$16 sps:$4 sm:$0xff]  }
  0x89   : > { %3467 = vmatprep.subr.bf16.mxu1 %v4947_v18  ;;  %v4969_v33 = vld [vmem:[%s6137_s1 + $0x104] ss:$16 sps:$4 sm:$0xff]   ;;  %v4973_v35 = vld [vmem:[%s6137_s1 + $0x100] ss:$16 sps:$4 sm:$0xff]  }
  0x8a   : > { %v4971_v34 = vld [vmem:[%s6137_s1 + $0x304] ss:$16 sps:$4 sm:$0xff]   ;;  %v4974_v36 = vld [vmem:[%s6137_s1 + $0x300] ss:$16 sps:$4 sm:$0xff]  }
  0x8b   : > { %3427 = vmatpush1.bf16.msra.mxu0 %v4949_v19  ;;  %v4975_v37 = vld [vmem:[%s6137_s1 + $0x124] ss:$16 sps:$4 sm:$0xff]   ;;  %v4979_v39 = vld [vmem:[%s6137_s1 + $0x120] ss:$16 sps:$4 sm:$0xff]  }
  0x8c   : > { %3468 = vmatpush1.bf16.msra.mxu1 %v4950_v20  ;;  %3428 = vmatprep.subr.bf16.mxu0 %v4951_v21  ;;  %v4977_v38 = vld [vmem:[%s6137_s1 + $0x324] ss:$16 sps:$4 sm:$0xff]   ;;  %v4980_v40 = vld [vmem:[%s6137_s1 + $0x320] ss:$16 sps:$4 sm:$0xff]  }
  0x8d   : > { %3469 = vmatprep.subr.bf16.mxu1 %v4953_v22  ;;  %v4981_v41 = vld [vmem:[%s6137_s1 + $0x144] ss:$16 sps:$4 sm:$0xff]   ;;  %v4985_v43 = vld [vmem:[%s6137_s1 + $0x140] ss:$16 sps:$4 sm:$0xff]  }
  0x8e   : > { %v4983_v42 = vld [vmem:[%s6137_s1 + $0x344] ss:$16 sps:$4 sm:$0xff]   ;;  %v4986_v44 = vld [vmem:[%s6137_s1 + $0x340] ss:$16 sps:$4 sm:$0xff]  }
  0x8f   : > { %3429 = vmatpush1.bf16.msra.mxu0 %v4955_v23  ;;  %v4987_v45 = vld [vmem:[%s6137_s1 + $0x164] ss:$16 sps:$4 sm:$0xff]   ;;  %v4991_v50 = vld [vmem:[%s6137_s1 + $0x160] ss:$16 sps:$4 sm:$0xff]  }
  0x90   : > { %3470 = vmatpush1.bf16.msra.mxu1 %v4956_v24  ;;  %3430 = vmatprep.subr.bf16.mxu0 %v4957_v25  ;;  %v4989_v46 = vld [vmem:[%s6137_s1 + $0x364] ss:$16 sps:$4 sm:$0xff]   ;;  %v4992_v51 = vld [vmem:[%s6137_s1 + $0x360] ss:$16 sps:$4 sm:$0xff]  }
  0x91   : > { %3471 = vmatprep.subr.bf16.mxu1 %v4959_v26  ;;  %v282_v47 = vld [vmem:[%s6159_s30] sm:$0xff] }
  0x92   : > { %v6215_v48 = vcombine.high %v282_v47, %v282_v47  ;;  %v4993_v53 = vld [vmem:[%s6137_s1 + $0x184] ss:$16 sps:$4 sm:$0xff]   ;;  %v4997_v55 = vld [vmem:[%s6137_s1 + $0x180] ss:$16 sps:$4 sm:$0xff]   ;;  %v6242_v7 = vcombine.low %v282_v47, %v282_v47 }
  0x93   : > { %3431 = vmatpush1.bf16.msra.mxu0 %v4961_v27  ;;  %v4995_v54 = vld [vmem:[%s6137_s1 + $0x384] ss:$16 sps:$4 sm:$0xff]   ;;  %v4998_v56 = vld [vmem:[%s6137_s1 + $0x380] ss:$16 sps:$4 sm:$0xff]  }
  0x94   : > { %3472 = vmatpush1.bf16.msra.mxu1 %v4962_v28  ;;  %3432 = vmatprep.subr.bf16.mxu0 %v4963_v29  ;;  %v4999_v57 = vld [vmem:[%s6137_s1 + $0x1a4] ss:$16 sps:$4 sm:$0xff]   ;;  %v5003_v59 = vld [vmem:[%s6137_s1 + $0x1a0] ss:$16 sps:$4 sm:$0xff]  }
  0x95   : > { %3473 = vmatprep.subr.bf16.mxu1 %v4965_v30  ;;  %3450 = vmatprep.mubr.bf16.mxu0 %v6215_v48  ;;  %v5001_v58 = vld [vmem:[%s6137_s1 + $0x3a4] ss:$16 sps:$4 sm:$0xff]   ;;  %v5004_v60 = vld [vmem:[%s6137_s1 + $0x3a0] ss:$16 sps:$4 sm:$0xff]  }
  0x96   : > { %v5005_v61 = vld [vmem:[%s6137_s1 + $0x1c4] ss:$16 sps:$4 sm:$0xff]   ;;  %v5009_v63 = vld [vmem:[%s6137_s1 + $0x1c0] ss:$16 sps:$4 sm:$0xff]  }
  0x97   : > { %3433 = vmatpush1.bf16.msra.mxu0 %v4967_v31  ;;  %v5007_v62 = vld [vmem:[%s6137_s1 + $0x3c4] ss:$16 sps:$4 sm:$0xff]   ;;  %v5010_v0 = vld [vmem:[%s6137_s1 + $0x3c0] ss:$16 sps:$4 sm:$0xff]  }
  0x98   : > { %3474 = vmatpush1.bf16.msra.mxu1 %v4968_v32  ;;  %3434 = vmatprep.subr.bf16.mxu0 %v4969_v33  ;;  %v5011_v1 = vld [vmem:[%s6137_s1 + $0x1e4] ss:$16 sps:$4 sm:$0xff]   ;;  %v5015_v3 = vld [vmem:[%s6137_s1 + $0x1e0] ss:$16 sps:$4 sm:$0xff]  }
  0x99   : > { %3475 = vmatprep.subr.bf16.mxu1 %v4971_v34  ;;  %v5013_v2 = vld [vmem:[%s6137_s1 + $0x3e4] ss:$16 sps:$4 sm:$0xff]   ;;  %v5016_v4 = vld [vmem:[%s6137_s1 + $0x3e0] ss:$16 sps:$4 sm:$0xff]   ;;  %v6276_v34 = vld [vmem:[%s6159_s30 + $0x18] sm:$0xff] }
  0x9a   : > { %v5023_v5 = vld [vmem:[%s6137_s1 + $0x404] ss:$16 sps:$4 sm:$0xff]   ;;  %v5021_v9 = vld [vmem:[%s6137_s1 + $0x400] ss:$16 sps:$4 sm:$0xff]  }
  0x9b   : > { %3435 = vmatpush1.bf16.msra.mxu0 %v4973_v35  ;;  %v5026_v6 = vld [vmem:[%s6137_s1 + $0x604] ss:$16 sps:$4 sm:$0xff]   ;;  %v5024_v10 = vld [vmem:[%s6137_s1 + $0x600] ss:$16 sps:$4 sm:$0xff]  }
  0x9c   : > { %3476 = vmatpush1.bf16.msra.mxu1 %v4974_v36  ;;  %3436 = vmatprep.subr.bf16.mxu0 %v4975_v37  ;;  %v5029_v11 = vld [vmem:[%s6137_s1 + $0x424] ss:$16 sps:$4 sm:$0xff]   ;;  %v5027_v13 = vld [vmem:[%s6137_s1 + $0x420] ss:$16 sps:$4 sm:$0xff]  }
  0x9d   : > { %3477 = vmatprep.subr.bf16.mxu1 %v4977_v38  ;;  %v5032_v12 = vld [vmem:[%s6137_s1 + $0x624] ss:$16 sps:$4 sm:$0xff]   ;;  %v5030_v14 = vld [vmem:[%s6137_s1 + $0x620] ss:$16 sps:$4 sm:$0xff]   ;;  %v6286_v38 = vcombine.high %v6276_v34, %v6276_v34 }
  0x9e   : > { %v5035_v15 = vld [vmem:[%s6137_s1 + $0x444] ss:$16 sps:$4 sm:$0xff]   ;;  %v5033_v17 = vld [vmem:[%s6137_s1 + $0x440] ss:$16 sps:$4 sm:$0xff]  }
  0x9f   : > { %3437 = vmatpush1.bf16.msra.mxu0 %v4979_v39  ;;  %v5038_v16 = vld [vmem:[%s6137_s1 + $0x644] ss:$16 sps:$4 sm:$0xff]   ;;  %v5036_v18 = vld [vmem:[%s6137_s1 + $0x640] ss:$16 sps:$4 sm:$0xff]  }
  0xa0   : > { %3478 = vmatpush1.bf16.msra.mxu1 %v4980_v40  ;;  %3438 = vmatprep.subr.bf16.mxu0 %v4981_v41  ;;  %v5041_v19 = vld [vmem:[%s6137_s1 + $0x464] ss:$16 sps:$4 sm:$0xff]   ;;  %v5039_v21 = vld [vmem:[%s6137_s1 + $0x460] ss:$16 sps:$4 sm:$0xff]  }
  0xa1   : > { %3479 = vmatprep.subr.bf16.mxu1 %v4983_v42  ;;  %v5044_v20 = vld [vmem:[%s6137_s1 + $0x664] ss:$16 sps:$4 sm:$0xff]   ;;  %v5042_v22 = vld [vmem:[%s6137_s1 + $0x660] ss:$16 sps:$4 sm:$0xff]  }
  0xa2   : > { %v5047_v23 = vld [vmem:[%s6137_s1 + $0x484] ss:$16 sps:$4 sm:$0xff]   ;;  %v5045_v25 = vld [vmem:[%s6137_s1 + $0x480] ss:$16 sps:$4 sm:$0xff]  }
  0xa3   : > { %3439 = vmatpush1.bf16.msra.mxu0 %v4985_v43  ;;  %v5050_v24 = vld [vmem:[%s6137_s1 + $0x684] ss:$16 sps:$4 sm:$0xff]   ;;  %v5048_v26 = vld [vmem:[%s6137_s1 + $0x680] ss:$16 sps:$4 sm:$0xff]  }
  0xa4   : > { %3480 = vmatpush1.bf16.msra.mxu1 %v4986_v44  ;;  %3440 = vmatprep.subr.bf16.mxu0 %v4987_v45  ;;  %v5053_v27 = vld [vmem:[%s6137_s1 + $0x4a4] ss:$16 sps:$4 sm:$0xff]   ;;  %v5051_v29 = vld [vmem:[%s6137_s1 + $0x4a0] ss:$16 sps:$4 sm:$0xff]  }
  0xa5   : > { %3481 = vmatprep.subr.bf16.mxu1 %v4989_v46  ;;  %v5056_v28 = vld [vmem:[%s6137_s1 + $0x6a4] ss:$16 sps:$4 sm:$0xff]   ;;  %v5054_v30 = vld [vmem:[%s6137_s1 + $0x6a0] ss:$16 sps:$4 sm:$0xff]  }
  0xa6   : > { %v5059_v31 = vld [vmem:[%s6137_s1 + $0x4c4] ss:$16 sps:$4 sm:$0xff]   ;;  %v5057_v35 = vld [vmem:[%s6137_s1 + $0x4c0] ss:$16 sps:$4 sm:$0xff]  }
  0xa7   : > { %3441 = vmatpush1.bf16.msra.mxu0 %v4991_v50  ;;  %v5062_v32 = vld [vmem:[%s6137_s1 + $0x6c4] ss:$16 sps:$4 sm:$0xff]   ;;  %v5060_v36 = vld [vmem:[%s6137_s1 + $0x6c0] ss:$16 sps:$4 sm:$0xff]  }
  0xa8   : > { %3482 = vmatpush1.bf16.msra.mxu1 %v4992_v51  ;;  %3442 = vmatprep.subr.bf16.mxu0 %v4993_v53  ;;  %v6273_v33 = vld [vmem:[%s6159_s30 + $0x10] sm:$0xff] }
  0xa9   : > { %3483 = vmatprep.subr.bf16.mxu1 %v4995_v54  ;;  %v6282_v37 = vcombine.high %v6273_v33, %v6273_v33  ;;  %v5065_v39 = vld [vmem:[%s6137_s1 + $0x4e4] ss:$16 sps:$4 sm:$0xff]   ;;  %v5063_v41 = vld [vmem:[%s6137_s1 + $0x4e0] ss:$16 sps:$4 sm:$0xff]  }
  0xaa   : > { %v5068_v40 = vld [vmem:[%s6137_s1 + $0x6e4] ss:$16 sps:$4 sm:$0xff]   ;;  %v5066_v42 = vld [vmem:[%s6137_s1 + $0x6e0] ss:$16 sps:$4 sm:$0xff]  }
  0xab   : > { %3443 = vmatpush1.bf16.msra.mxu0 %v4997_v55  ;;  %v5071_v43 = vld [vmem:[%s6137_s1 + $0x504] ss:$16 sps:$4 sm:$0xff]   ;;  %v5069_v45 = vld [vmem:[%s6137_s1 + $0x500] ss:$16 sps:$4 sm:$0xff]  }
  0xac   : > { %3484 = vmatpush1.bf16.msra.mxu1 %v4998_v56  ;;  %3444 = vmatprep.subr.bf16.mxu0 %v4999_v57  ;;  %v5074_v44 = vld [vmem:[%s6137_s1 + $0x704] ss:$16 sps:$4 sm:$0xff]   ;;  %v5072_v46 = vld [vmem:[%s6137_s1 + $0x700] ss:$16 sps:$4 sm:$0xff]  }
  0xad   : > { %3485 = vmatprep.subr.bf16.mxu1 %v5001_v58  ;;  %v5077_v47 = vld [vmem:[%s6137_s1 + $0x524] ss:$16 sps:$4 sm:$0xff]   ;;  %v5075_v50 = vld [vmem:[%s6137_s1 + $0x520] ss:$16 sps:$4 sm:$0xff]  }
  0xae   : > { %v5080_v49 = vld [vmem:[%s6137_s1 + $0x724] ss:$16 sps:$4 sm:$0xff]   ;;  %v5078_v51 = vld [vmem:[%s6137_s1 + $0x720] ss:$16 sps:$4 sm:$0xff]  }
  0xaf   : > { %3445 = vmatpush1.bf16.msra.mxu0 %v5003_v59  ;;  %v5083_v53 = vld [vmem:[%s6137_s1 + $0x544] ss:$16 sps:$4 sm:$0xff]   ;;  %v5081_v55 = vld [vmem:[%s6137_s1 + $0x540] ss:$16 sps:$4 sm:$0xff]  }
  0xb0   : > { %3486 = vmatpush1.bf16.msra.mxu1 %v5004_v60  ;;  %3446 = vmatprep.subr.bf16.mxu0 %v5005_v61  ;;  %v5086_v54 = vld [vmem:[%s6137_s1 + $0x744] ss:$16 sps:$4 sm:$0xff]   ;;  %v5084_v56 = vld [vmem:[%s6137_s1 + $0x740] ss:$16 sps:$4 sm:$0xff]  }
  0xb1   : > { %3487 = vmatprep.subr.bf16.mxu1 %v5007_v62  ;;  %v5089_v57 = vld [vmem:[%s6137_s1 + $0x564] ss:$16 sps:$4 sm:$0xff]   ;;  %v5087_v59 = vld [vmem:[%s6137_s1 + $0x560] ss:$16 sps:$4 sm:$0xff]  }
  0xb2   : > { %v5092_v58 = vld [vmem:[%s6137_s1 + $0x764] ss:$16 sps:$4 sm:$0xff]   ;;  %v5090_v60 = vld [vmem:[%s6137_s1 + $0x760] ss:$16 sps:$4 sm:$0xff]  }
  0xb3   : > { %3447 = vmatpush1.bf16.msra.mxu0 %v5009_v63  ;;  %v5095_v61 = vld [vmem:[%s6137_s1 + $0x584] ss:$16 sps:$4 sm:$0xff]   ;;  %v5093_v63 = vld [vmem:[%s6137_s1 + $0x580] ss:$16 sps:$4 sm:$0xff]  }
  0xb4   : > { %3488 = vmatpush1.bf16.msra.mxu1 %v5010_v0  ;;  %3448 = vmatprep.subr.bf16.mxu0 %v5011_v1  ;;  %v5098_v62 = vld [vmem:[%s6137_s1 + $0x784] ss:$16 sps:$4 sm:$0xff]   ;;  %v5096_v0 = vld [vmem:[%s6137_s1 + $0x780] ss:$16 sps:$4 sm:$0xff]  }
  0xb5   : > { %3489 = vmatprep.subr.bf16.mxu1 %v5013_v2  ;;  %v5101_v1 = vld [vmem:[%s6137_s1 + $0x5a4] ss:$16 sps:$4 sm:$0xff]  }
  0xb6   : > { %v5104_v2 = vld [vmem:[%s6137_s1 + $0x7a4] ss:$16 sps:$4 sm:$0xff]  }
  0xb7   : > { %3449 = vmatpush1.bf16.msra.mxu0 %v5015_v3  ;;  %v5099_v3 = vld [vmem:[%s6137_s1 + $0x5a0] ss:$16 sps:$4 sm:$0xff]  }
  0xb8   : > { %3490 = vmatpush1.bf16.msra.mxu1 %v5016_v4  ;;  %3500 = vmatprep.subr.bf16.mxu0 %v5023_v5  ;;  %v5102_v4 = vld [vmem:[%s6137_s1 + $0x7a0] ss:$16 sps:$4 sm:$0xff]   ;;  %v5107_v5 = vld [vmem:[%s6137_s1 + $0x5c4] ss:$16 sps:$4 sm:$0xff]  }
  0xb9   : > { %3541 = vmatprep.subr.bf16.mxu1 %v5026_v6  ;;  %v5110_v6 = vld [vmem:[%s6137_s1 + $0x7c4] ss:$16 sps:$4 sm:$0xff]  }
  0xba   : > { %3451 = vmatmul.mubr.bf16.vlgmr.msra.gmra.mrb[0].mxu0 %v6242_v7 }
  0xbb   : > { %3492 = vmatmul.mubr.bf16.vlgmr.msra.gmra.mrb[0].mxu1 %v6244_v8  ;;  %3501 = vmatpush1.bf16.msra.mxu0 %v5021_v9  ;;  %v5105_v9 = vld [vmem:[%s6137_s1 + $0x5c0] ss:$16 sps:$4 sm:$0xff]  }
  0xbc   : > { %3542 = vmatpush1.bf16.msra.mxu1 %v5024_v10  ;;  %3502 = vmatprep.subr.bf16.mxu0 %v5029_v11  ;;  %v5108_v10 = vld [vmem:[%s6137_s1 + $0x7c0] ss:$16 sps:$4 sm:$0xff]   ;;  %v5113_v11 = vld [vmem:[%s6137_s1 + $0x5e4] ss:$16 sps:$4 sm:$0xff]  }
  0xbd   : > { %3543 = vmatprep.subr.bf16.mxu1 %v5032_v12  ;;  %3532 = vmatprep.mubr.bf16.mxu0 %v6282_v37  ;;  %v5116_v12 = vld [vmem:[%s6137_s1 + $0x7e4] ss:$16 sps:$4 sm:$0xff]  }
  0xbe   : > { %3573 = vmatprep.mubr.bf16.mxu1 %v6286_v38 }
  0xbf   : > { %3503 = vmatpush1.bf16.msra.mxu0 %v5027_v13  ;;  %v5111_v13 = vld [vmem:[%s6137_s1 + $0x5e0] ss:$16 sps:$4 sm:$0xff]  }
  0xc0   : > { %3544 = vmatpush1.bf16.msra.mxu1 %v5030_v14  ;;  %3504 = vmatprep.subr.bf16.mxu0 %v5035_v15  ;;  %v5114_v14 = vld [vmem:[%s6137_s1 + $0x7e0] ss:$16 sps:$4 sm:$0xff]   ;;  %v5123_v15 = vld [vmem:[%s6137_s1 + $0x804] ss:$16 sps:$4 sm:$0xff]  }
  0xc1   : > { %3545 = vmatprep.subr.bf16.mxu1 %v5038_v16  ;;  %v5126_v16 = vld [vmem:[%s6137_s1 + $0xa04] ss:$16 sps:$4 sm:$0xff]  }
  0xc3   : > { %3505 = vmatpush1.bf16.msra.mxu0 %v5033_v17  ;;  %v6330_v17 = vcombine.low %v6273_v33, %v6273_v33  ;;  %v5141_v33 = vld [vmem:[%s6137_s1 + $0x864] ss:$16 sps:$4 sm:$0xff]  }
  0xc4   : > { %3546 = vmatpush1.bf16.msra.mxu1 %v5036_v18  ;;  %3506 = vmatprep.subr.bf16.mxu0 %v5041_v19  ;;  %v6334_v18 = vcombine.low %v6276_v34, %v6276_v34  ;;  %v5121_v19 = vld [vmem:[%s6137_s1 + $0x800] ss:$16 sps:$4 sm:$0xff]   ;;  %v5144_v34 = vld [vmem:[%s6137_s1 + $0xa64] ss:$16 sps:$4 sm:$0xff]  }
  0xc5   : > { %3547 = vmatprep.subr.bf16.mxu1 %v5044_v20  ;;  %v5124_v20 = vld [vmem:[%s6137_s1 + $0xa00] ss:$16 sps:$4 sm:$0xff]  }
  0xc7   : > { %3507 = vmatpush1.bf16.msra.mxu0 %v5039_v21  ;;  %v5129_v21 = vld [vmem:[%s6137_s1 + $0x824] ss:$16 sps:$4 sm:$0xff]  }
  0xc8   : > { %3548 = vmatpush1.bf16.msra.mxu1 %v5042_v22  ;;  %3508 = vmatprep.subr.bf16.mxu0 %v5047_v23  ;;  %v5132_v22 = vld [vmem:[%s6137_s1 + $0xa24] ss:$16 sps:$4 sm:$0xff]  }
  0xc9   : > { %3549 = vmatprep.subr.bf16.mxu1 %v5050_v24  ;;  %v6341_v23 = vld [vmem:[%s6159_s30 + $0x20] sm:$0xff]  ;;  %v6344_v24 = vld [vmem:[%s6159_s30 + $0x28] sm:$0xff] }
  0xcb   : > { %3509 = vmatpush1.bf16.msra.mxu0 %v5045_v25  ;;  %v6348_v25 = vcombine.high %v6341_v23, %v6341_v23 }
  0xcc   : > { %3550 = vmatpush1.bf16.msra.mxu1 %v5048_v26  ;;  %3510 = vmatprep.subr.bf16.mxu0 %v5053_v27  ;;  %v6352_v26 = vcombine.high %v6344_v24, %v6344_v24  ;;  %v5127_v27 = vld [vmem:[%s6137_s1 + $0x820] ss:$16 sps:$4 sm:$0xff]  }
  0xcd   : > { %3551 = vmatprep.subr.bf16.mxu1 %v5056_v28  ;;  %v5130_v28 = vld [vmem:[%s6137_s1 + $0xa20] ss:$16 sps:$4 sm:$0xff]  }
  0xcf   : > { %3511 = vmatpush1.bf16.msra.mxu0 %v5051_v29  ;;  %v5135_v29 = vld [vmem:[%s6137_s1 + $0x844] ss:$16 sps:$4 sm:$0xff]  }
  0xd0   : > { %3552 = vmatpush1.bf16.msra.mxu1 %v5054_v30  ;;  %3512 = vmatprep.subr.bf16.mxu0 %v5059_v31  ;;  %v5138_v30 = vld [vmem:[%s6137_s1 + $0xa44] ss:$16 sps:$4 sm:$0xff]   ;;  %v5133_v31 = vld [vmem:[%s6137_s1 + $0x840] ss:$16 sps:$4 sm:$0xff]  }
  0xd1   : > { %3553 = vmatprep.subr.bf16.mxu1 %v5062_v32  ;;  %v5136_v32 = vld [vmem:[%s6137_s1 + $0xa40] ss:$16 sps:$4 sm:$0xff]  }
  0xd3   : > { %3513 = vmatpush1.bf16.msra.mxu0 %v5057_v35  ;;  %v5139_v35 = vld [vmem:[%s6137_s1 + $0x860] ss:$16 sps:$4 sm:$0xff]  }
  0xd4   : > { %3554 = vmatpush1.bf16.msra.mxu1 %v5060_v36  ;;  %3514 = vmatprep.subr.bf16.mxu0 %v5065_v39  ;;  %v5142_v36 = vld [vmem:[%s6137_s1 + $0xa60] ss:$16 sps:$4 sm:$0xff]   ;;  %v5147_v39 = vld [vmem:[%s6137_s1 + $0x884] ss:$16 sps:$4 sm:$0xff]  }
  0xd5   : > { %3555 = vmatprep.subr.bf16.mxu1 %v5068_v40  ;;  %v5150_v40 = vld [vmem:[%s6137_s1 + $0xa84] ss:$16 sps:$4 sm:$0xff]  }
  0xd7   : > { %3515 = vmatpush1.bf16.msra.mxu0 %v5063_v41  ;;  %v5145_v41 = vld [vmem:[%s6137_s1 + $0x880] ss:$16 sps:$4 sm:$0xff]  }
  0xd8   : > { %3556 = vmatpush1.bf16.msra.mxu1 %v5066_v42  ;;  %3516 = vmatprep.subr.bf16.mxu0 %v5071_v43  ;;  %v5148_v42 = vld [vmem:[%s6137_s1 + $0xa80] ss:$16 sps:$4 sm:$0xff]   ;;  %v5153_v43 = vld [vmem:[%s6137_s1 + $0x8a4] ss:$16 sps:$4 sm:$0xff]  }
  0xd9   : > { %3557 = vmatprep.subr.bf16.mxu1 %v5074_v44  ;;  %v5156_v44 = vld [vmem:[%s6137_s1 + $0xaa4] ss:$16 sps:$4 sm:$0xff]  }
  0xdb   : > { %3517 = vmatpush1.bf16.msra.mxu0 %v5069_v45  ;;  %v5151_v45 = vld [vmem:[%s6137_s1 + $0x8a0] ss:$16 sps:$4 sm:$0xff]  }
  0xdc   : > { %3558 = vmatpush1.bf16.msra.mxu1 %v5072_v46  ;;  %3518 = vmatprep.subr.bf16.mxu0 %v5077_v47  ;;  %v5154_v46 = vld [vmem:[%s6137_s1 + $0xaa0] ss:$16 sps:$4 sm:$0xff]   ;;  %v5159_v47 = vld [vmem:[%s6137_s1 + $0x8c4] ss:$16 sps:$4 sm:$0xff]  }
  0xdd   : > { %3559 = vmatprep.subr.bf16.mxu1 %v5080_v49  ;;  %v5162_v49 = vld [vmem:[%s6137_s1 + $0xac4] ss:$16 sps:$4 sm:$0xff]  }
  0xdf   : > { %3519 = vmatpush1.bf16.msra.mxu0 %v5075_v50  ;;  %v5157_v50 = vld [vmem:[%s6137_s1 + $0x8c0] ss:$16 sps:$4 sm:$0xff]  }
  0xe0   : > { %3560 = vmatpush1.bf16.msra.mxu1 %v5078_v51  ;;  %3520 = vmatprep.subr.bf16.mxu0 %v5083_v53  ;;  %v5160_v51 = vld [vmem:[%s6137_s1 + $0xac0] ss:$16 sps:$4 sm:$0xff]   ;;  %v5165_v53 = vld [vmem:[%s6137_s1 + $0x8e4] ss:$16 sps:$4 sm:$0xff]  }
  0xe1   : > { %3561 = vmatprep.subr.bf16.mxu1 %v5086_v54  ;;  %v5168_v54 = vld [vmem:[%s6137_s1 + $0xae4] ss:$16 sps:$4 sm:$0xff]  }
  0xe3   : > { %3521 = vmatpush1.bf16.msra.mxu0 %v5081_v55  ;;  %v5163_v55 = vld [vmem:[%s6137_s1 + $0x8e0] ss:$16 sps:$4 sm:$0xff]  }
  0xe4   : > { %3562 = vmatpush1.bf16.msra.mxu1 %v5084_v56  ;;  %3522 = vmatprep.subr.bf16.mxu0 %v5089_v57  ;;  %v5166_v56 = vld [vmem:[%s6137_s1 + $0xae0] ss:$16 sps:$4 sm:$0xff]   ;;  %v5171_v57 = vld [vmem:[%s6137_s1 + $0x904] ss:$16 sps:$4 sm:$0xff]  }
  0xe5   : > { %3563 = vmatprep.subr.bf16.mxu1 %v5092_v58  ;;  %v5174_v58 = vld [vmem:[%s6137_s1 + $0xb04] ss:$16 sps:$4 sm:$0xff]  }
  0xe7   : > { %3523 = vmatpush1.bf16.msra.mxu0 %v5087_v59  ;;  %v5169_v59 = vld [vmem:[%s6137_s1 + $0x900] ss:$16 sps:$4 sm:$0xff]  }
  0xe8   : > { %3564 = vmatpush1.bf16.msra.mxu1 %v5090_v60  ;;  %3524 = vmatprep.subr.bf16.mxu0 %v5095_v61  ;;  %v5172_v60 = vld [vmem:[%s6137_s1 + $0xb00] ss:$16 sps:$4 sm:$0xff]   ;;  %v5177_v61 = vld [vmem:[%s6137_s1 + $0x924] ss:$16 sps:$4 sm:$0xff]  }
  0xe9   : > { %3565 = vmatprep.subr.bf16.mxu1 %v5098_v62  ;;  %v5180_v62 = vld [vmem:[%s6137_s1 + $0xb24] ss:$16 sps:$4 sm:$0xff]  }
  0xeb   : > { %3525 = vmatpush1.bf16.msra.mxu0 %v5093_v63  ;;  %v5175_v63 = vld [vmem:[%s6137_s1 + $0x920] ss:$16 sps:$4 sm:$0xff]  }
  0xec   : > { %3566 = vmatpush1.bf16.msra.mxu1 %v5096_v0  ;;  %3526 = vmatprep.subr.bf16.mxu0 %v5101_v1  ;;  %v5178_v0 = vld [vmem:[%s6137_s1 + $0xb20] ss:$16 sps:$4 sm:$0xff]   ;;  %v5183_v1 = vld [vmem:[%s6137_s1 + $0x944] ss:$16 sps:$4 sm:$0xff]  }
  0xed   : > { %3567 = vmatprep.subr.bf16.mxu1 %v5104_v2  ;;  %v5186_v2 = vld [vmem:[%s6137_s1 + $0xb44] ss:$16 sps:$4 sm:$0xff]  }
  0xef   : > { %3527 = vmatpush1.bf16.msra.mxu0 %v5099_v3  ;;  %v5181_v3 = vld [vmem:[%s6137_s1 + $0x940] ss:$16 sps:$4 sm:$0xff]  }
  0xf0   : > { %3568 = vmatpush1.bf16.msra.mxu1 %v5102_v4  ;;  %3528 = vmatprep.subr.bf16.mxu0 %v5107_v5  ;;  %v5184_v4 = vld [vmem:[%s6137_s1 + $0xb40] ss:$16 sps:$4 sm:$0xff]   ;;  %v5189_v5 = vld [vmem:[%s6137_s1 + $0x964] ss:$16 sps:$4 sm:$0xff]  }
  0xf1   : > { %3569 = vmatprep.subr.bf16.mxu1 %v5110_v6  ;;  %v5192_v6 = vld [vmem:[%s6137_s1 + $0xb64] ss:$16 sps:$4 sm:$0xff]  }
  0xf3   : > { %3529 = vmatpush1.bf16.msra.mxu0 %v5105_v9  ;;  %v5187_v9 = vld [vmem:[%s6137_s1 + $0x960] ss:$16 sps:$4 sm:$0xff]  }
  0xf4   : > { %3570 = vmatpush1.bf16.msra.mxu1 %v5108_v10  ;;  %3530 = vmatprep.subr.bf16.mxu0 %v5113_v11  ;;  %v5190_v10 = vld [vmem:[%s6137_s1 + $0xb60] ss:$16 sps:$4 sm:$0xff]   ;;  %v5195_v11 = vld [vmem:[%s6137_s1 + $0x984] ss:$16 sps:$4 sm:$0xff]  }
  0xf5   : > { %3571 = vmatprep.subr.bf16.mxu1 %v5116_v12  ;;  %v5198_v12 = vld [vmem:[%s6137_s1 + $0xb84] ss:$16 sps:$4 sm:$0xff]  }
  0xf7   : > { %3531 = vmatpush1.bf16.msra.mxu0 %v5111_v13  ;;  %v5193_v13 = vld [vmem:[%s6137_s1 + $0x980] ss:$16 sps:$4 sm:$0xff]  }
  0xf8   : > { %3572 = vmatpush1.bf16.msra.mxu1 %v5114_v14  ;;  %3582 = vmatprep.subr.bf16.mxu0 %v5123_v15  ;;  %v5196_v14 = vld [vmem:[%s6137_s1 + $0xb80] ss:$16 sps:$4 sm:$0xff]   ;;  %v5201_v15 = vld [vmem:[%s6137_s1 + $0x9a4] ss:$16 sps:$4 sm:$0xff]  }
  0xf9   : > { %3623 = vmatprep.subr.bf16.mxu1 %v5126_v16  ;;  %v5204_v16 = vld [vmem:[%s6137_s1 + $0xba4] ss:$16 sps:$4 sm:$0xff]  }
  0xfa   : > { %3533 = vmatmul.mubr.bf16.vlgmr.msra.gmra.mrb[4].mxu0 %v6330_v17 }
  0xfb   : > { %3574 = vmatmul.mubr.bf16.vlgmr.msra.gmra.mrb[4].mxu1 %v6334_v18  ;;  %3583 = vmatpush1.bf16.msra.mxu0 %v5121_v19  ;;  %v5199_v19 = vld [vmem:[%s6137_s1 + $0x9a0] ss:$16 sps:$4 sm:$0xff]  }
  0xfc   : > { %3624 = vmatpush1.bf16.msra.mxu1 %v5124_v20  ;;  %3584 = vmatprep.subr.bf16.mxu0 %v5129_v21  ;;  %v5202_v20 = vld [vmem:[%s6137_s1 + $0xba0] ss:$16 sps:$4 sm:$0xff]   ;;  %v5207_v21 = vld [vmem:[%s6137_s1 + $0x9c4] ss:$16 sps:$4 sm:$0xff]  }
  0xfd   : > { %3625 = vmatprep.subr.bf16.mxu1 %v5132_v22  ;;  %3614 = vmatprep.mubr.bf16.mxu0 %v6348_v25  ;;  %v5210_v22 = vld [vmem:[%s6137_s1 + $0xbc4] ss:$16 sps:$4 sm:$0xff]  }
  0xfe   : > { %3655 = vmatprep.mubr.bf16.mxu1 %v6352_v26 }
  0xff   : > { %3585 = vmatpush1.bf16.msra.mxu0 %v5127_v27  ;;  %v5205_v27 = vld [vmem:[%s6137_s1 + $0x9c0] ss:$16 sps:$4 sm:$0xff]  }
 0x100   : > { %3626 = vmatpush1.bf16.msra.mxu1 %v5130_v28  ;;  %3586 = vmatprep.subr.bf16.mxu0 %v5135_v29  ;;  %v5208_v28 = vld [vmem:[%s6137_s1 + $0xbc0] ss:$16 sps:$4 sm:$0xff]   ;;  %v5213_v29 = vld [vmem:[%s6137_s1 + $0x9e4] ss:$16 sps:$4 sm:$0xff]  }
 0x101   : > { %3627 = vmatprep.subr.bf16.mxu1 %v5138_v30  ;;  %v5216_v30 = vld [vmem:[%s6137_s1 + $0xbe4] ss:$16 sps:$4 sm:$0xff]  }
 0x103   : > { %3587 = vmatpush1.bf16.msra.mxu0 %v5133_v31  ;;  %v5211_v31 = vld [vmem:[%s6137_s1 + $0x9e0] ss:$16 sps:$4 sm:$0xff]  }
 0x104   : > { %3628 = vmatpush1.bf16.msra.mxu1 %v5136_v32  ;;  %3588 = vmatprep.subr.bf16.mxu0 %v5141_v33  ;;  %v5214_v32 = vld [vmem:[%s6137_s1 + $0xbe0] ss:$16 sps:$4 sm:$0xff]   ;;  %v5223_v33 = vld [vmem:[%s6137_s1 + $0xc04] ss:$16 sps:$4 sm:$0xff]  }
 0x105   : > { %3629 = vmatprep.subr.bf16.mxu1 %v5144_v34  ;;  %v5226_v34 = vld [vmem:[%s6137_s1 + $0xe04] ss:$16 sps:$4 sm:$0xff]  }
 0x107   : > { %3589 = vmatpush1.bf16.msra.mxu0 %v5139_v35  ;;  %v5221_v35 = vld [vmem:[%s6137_s1 + $0xc00] ss:$16 sps:$4 sm:$0xff]  }
 0x108   : > { %3630 = vmatpush1.bf16.msra.mxu1 %v5142_v36  ;;  %3590 = vmatprep.subr.bf16.mxu0 %v5147_v39  ;;  %v5224_v36 = vld [vmem:[%s6137_s1 + $0xe00] ss:$16 sps:$4 sm:$0xff]   ;;  %v6422_v39 = vcombine.low %v6341_v23, %v6341_v23 }
 0x109   : > { %3631 = vmatprep.subr.bf16.mxu1 %v5150_v40  ;;  %v6426_v40 = vcombine.low %v6344_v24, %v6344_v24 }
 0x10b   : > { %3591 = vmatpush1.bf16.msra.mxu0 %v5145_v41  ;;  %v6429_v41 = vld [vmem:[%s6159_s30 + $0x30] sm:$0xff] }
 0x10c   : > { %3632 = vmatpush1.bf16.msra.mxu1 %v5148_v42  ;;  %3592 = vmatprep.subr.bf16.mxu0 %v5153_v43  ;;  %v6432_v42 = vld [vmem:[%s6159_s30 + $0x38] sm:$0xff]  ;;  %v5229_v43 = vld [vmem:[%s6137_s1 + $0xc24] ss:$16 sps:$4 sm:$0xff]   ;;  %v6438_v23 = vcombine.high %v6429_v41, %v6429_v41 }
 0x10d   : > { %3633 = vmatprep.subr.bf16.mxu1 %v5156_v44  ;;  %v5232_v44 = vld [vmem:[%s6137_s1 + $0xe24] ss:$16 sps:$4 sm:$0xff]   ;;  %v6442_v24 = vcombine.high %v6432_v42, %v6432_v42 }
 0x10f   : > { %3593 = vmatpush1.bf16.msra.mxu0 %v5151_v45  ;;  %v5227_v45 = vld [vmem:[%s6137_s1 + $0xc20] ss:$16 sps:$4 sm:$0xff]  }
 0x110   : > { %3634 = vmatpush1.bf16.msra.mxu1 %v5154_v46  ;;  %3594 = vmatprep.subr.bf16.mxu0 %v5159_v47  ;;  %v5230_v46 = vld [vmem:[%s6137_s1 + $0xe20] ss:$16 sps:$4 sm:$0xff]   ;;  %v5235_v47 = vld [vmem:[%s6137_s1 + $0xc44] ss:$16 sps:$4 sm:$0xff]  }
 0x111   : > { %3635 = vmatprep.subr.bf16.mxu1 %v5162_v49  ;;  %v5238_v49 = vld [vmem:[%s6137_s1 + $0xe44] ss:$16 sps:$4 sm:$0xff]  }
 0x113   : > { %3595 = vmatpush1.bf16.msra.mxu0 %v5157_v50  ;;  %v5233_v50 = vld [vmem:[%s6137_s1 + $0xc40] ss:$16 sps:$4 sm:$0xff]  }
 0x114   : > { %3636 = vmatpush1.bf16.msra.mxu1 %v5160_v51  ;;  %3596 = vmatprep.subr.bf16.mxu0 %v5165_v53  ;;  %v5236_v51 = vld [vmem:[%s6137_s1 + $0xe40] ss:$16 sps:$4 sm:$0xff]   ;;  %v5241_v53 = vld [vmem:[%s6137_s1 + $0xc64] ss:$16 sps:$4 sm:$0xff]  }
 0x115   : > { %3637 = vmatprep.subr.bf16.mxu1 %v5168_v54  ;;  %v5244_v54 = vld [vmem:[%s6137_s1 + $0xe64] ss:$16 sps:$4 sm:$0xff]  }
 0x117   : > { %3597 = vmatpush1.bf16.msra.mxu0 %v5163_v55  ;;  %v5239_v55 = vld [vmem:[%s6137_s1 + $0xc60] ss:$16 sps:$4 sm:$0xff]  }
 0x118   : > { %3638 = vmatpush1.bf16.msra.mxu1 %v5166_v56  ;;  %3598 = vmatprep.subr.bf16.mxu0 %v5171_v57  ;;  %v5242_v56 = vld [vmem:[%s6137_s1 + $0xe60] ss:$16 sps:$4 sm:$0xff]   ;;  %v5247_v57 = vld [vmem:[%s6137_s1 + $0xc84] ss:$16 sps:$4 sm:$0xff]  }
 0x119   : > { %3639 = vmatprep.subr.bf16.mxu1 %v5174_v58  ;;  %v5250_v58 = vld [vmem:[%s6137_s1 + $0xe84] ss:$16 sps:$4 sm:$0xff]  }
 0x11b   : > { %3599 = vmatpush1.bf16.msra.mxu0 %v5169_v59  ;;  %v5245_v59 = vld [vmem:[%s6137_s1 + $0xc80] ss:$16 sps:$4 sm:$0xff]  }
 0x11c   : > { %3640 = vmatpush1.bf16.msra.mxu1 %v5172_v60  ;;  %3600 = vmatprep.subr.bf16.mxu0 %v5177_v61  ;;  %v5248_v60 = vld [vmem:[%s6137_s1 + $0xe80] ss:$16 sps:$4 sm:$0xff]   ;;  %v5253_v61 = vld [vmem:[%s6137_s1 + $0xca4] ss:$16 sps:$4 sm:$0xff]  }
 0x11d   : > { %3641 = vmatprep.subr.bf16.mxu1 %v5180_v62  ;;  %v5256_v62 = vld [vmem:[%s6137_s1 + $0xea4] ss:$16 sps:$4 sm:$0xff]  }
 0x11f   : > { %3601 = vmatpush1.bf16.msra.mxu0 %v5175_v63  ;;  %v5251_v63 = vld [vmem:[%s6137_s1 + $0xca0] ss:$16 sps:$4 sm:$0xff]  }
 0x120   : > { %3642 = vmatpush1.bf16.msra.mxu1 %v5178_v0  ;;  %3602 = vmatprep.subr.bf16.mxu0 %v5183_v1  ;;  %v5254_v0 = vld [vmem:[%s6137_s1 + $0xea0] ss:$16 sps:$4 sm:$0xff]   ;;  %v5259_v1 = vld [vmem:[%s6137_s1 + $0xcc4] ss:$16 sps:$4 sm:$0xff]  }
 0x121   : > { %3643 = vmatprep.subr.bf16.mxu1 %v5186_v2  ;;  %v5262_v2 = vld [vmem:[%s6137_s1 + $0xec4] ss:$16 sps:$4 sm:$0xff]  }
 0x123   : > { %3603 = vmatpush1.bf16.msra.mxu0 %v5181_v3  ;;  %v5257_v3 = vld [vmem:[%s6137_s1 + $0xcc0] ss:$16 sps:$4 sm:$0xff]  }
 0x124   : > { %3644 = vmatpush1.bf16.msra.mxu1 %v5184_v4  ;;  %3604 = vmatprep.subr.bf16.mxu0 %v5189_v5  ;;  %v5260_v4 = vld [vmem:[%s6137_s1 + $0xec0] ss:$16 sps:$4 sm:$0xff]   ;;  %v5265_v5 = vld [vmem:[%s6137_s1 + $0xce4] ss:$16 sps:$4 sm:$0xff]  }
 0x125   : > { %3645 = vmatprep.subr.bf16.mxu1 %v5192_v6  ;;  %v5268_v6 = vld [vmem:[%s6137_s1 + $0xee4] ss:$16 sps:$4 sm:$0xff]  }
 0x127   : > { %3605 = vmatpush1.bf16.msra.mxu0 %v5187_v9  ;;  %v5263_v9 = vld [vmem:[%s6137_s1 + $0xce0] ss:$16 sps:$4 sm:$0xff]  }
 0x128   : > { %3646 = vmatpush1.bf16.msra.mxu1 %v5190_v10  ;;  %3606 = vmatprep.subr.bf16.mxu0 %v5195_v11  ;;  %v5266_v10 = vld [vmem:[%s6137_s1 + $0xee0] ss:$16 sps:$4 sm:$0xff]   ;;  %v5271_v11 = vld [vmem:[%s6137_s1 + $0xd04] ss:$16 sps:$4 sm:$0xff]  }
 0x129   : > { %3647 = vmatprep.subr.bf16.mxu1 %v5198_v12  ;;  %v5274_v12 = vld [vmem:[%s6137_s1 + $0xf04] ss:$16 sps:$4 sm:$0xff]  }
 0x12b   : > { %3607 = vmatpush1.bf16.msra.mxu0 %v5193_v13  ;;  %v5269_v13 = vld [vmem:[%s6137_s1 + $0xd00] ss:$16 sps:$4 sm:$0xff]  }
 0x12c   : > { %3648 = vmatpush1.bf16.msra.mxu1 %v5196_v14  ;;  %3608 = vmatprep.subr.bf16.mxu0 %v5201_v15  ;;  %v5272_v14 = vld [vmem:[%s6137_s1 + $0xf00] ss:$16 sps:$4 sm:$0xff]   ;;  %v5277_v15 = vld [vmem:[%s6137_s1 + $0xd24] ss:$16 sps:$4 sm:$0xff]  }
 0x12d   : > { %3649 = vmatprep.subr.bf16.mxu1 %v5204_v16  ;;  %v5280_v16 = vld [vmem:[%s6137_s1 + $0xf24] ss:$16 sps:$4 sm:$0xff]  }
 0x12f   : > { %3609 = vmatpush1.bf16.msra.mxu0 %v5199_v19  ;;  %v5275_v19 = vld [vmem:[%s6137_s1 + $0xd20] ss:$16 sps:$4 sm:$0xff]  }
 0x130   : > { %3650 = vmatpush1.bf16.msra.mxu1 %v5202_v20  ;;  %3610 = vmatprep.subr.bf16.mxu0 %v5207_v21  ;;  %v5278_v20 = vld [vmem:[%s6137_s1 + $0xf20] ss:$16 sps:$4 sm:$0xff]   ;;  %v5283_v21 = vld [vmem:[%s6137_s1 + $0xd44] ss:$16 sps:$4 sm:$0xff]  }
 0x131   : > { %3651 = vmatprep.subr.bf16.mxu1 %v5210_v22  ;;  %v5286_v22 = vld [vmem:[%s6137_s1 + $0xf44] ss:$16 sps:$4 sm:$0xff]  }
 0x133   : > { %3611 = vmatpush1.bf16.msra.mxu0 %v5205_v27  ;;  %v5281_v27 = vld [vmem:[%s6137_s1 + $0xd40] ss:$16 sps:$4 sm:$0xff]  }
 0x134   : > { %3652 = vmatpush1.bf16.msra.mxu1 %v5208_v28  ;;  %3612 = vmatprep.subr.bf16.mxu0 %v5213_v29  ;;  %v5284_v28 = vld [vmem:[%s6137_s1 + $0xf40] ss:$16 sps:$4 sm:$0xff]   ;;  %v5289_v29 = vld [vmem:[%s6137_s1 + $0xd64] ss:$16 sps:$4 sm:$0xff]  }
 0x135   : > { %3653 = vmatprep.subr.bf16.mxu1 %v5216_v30  ;;  %v5292_v30 = vld [vmem:[%s6137_s1 + $0xf64] ss:$16 sps:$4 sm:$0xff]  }
 0x137   : > { %3613 = vmatpush1.bf16.msra.mxu0 %v5211_v31  ;;  %v5287_v31 = vld [vmem:[%s6137_s1 + $0xd60] ss:$16 sps:$4 sm:$0xff]  }
 0x138   : > { %3654 = vmatpush1.bf16.msra.mxu1 %v5214_v32  ;;  %3664 = vmatprep.subr.bf16.mxu0 %v5223_v33  ;;  %v5290_v32 = vld [vmem:[%s6137_s1 + $0xf60] ss:$16 sps:$4 sm:$0xff]   ;;  %v5295_v33 = vld [vmem:[%s6137_s1 + $0xd84] ss:$16 sps:$4 sm:$0xff]  }
 0x139   : > { %3705 = vmatprep.subr.bf16.mxu1 %v5226_v34  ;;  %v5298_v34 = vld [vmem:[%s6137_s1 + $0xf84] ss:$16 sps:$4 sm:$0xff]  }
 0x13a   : > { %3615 = vmatmul.mubr.bf16.vlgmr.msra.gmra.mrb[8].mxu0 %v6422_v39 }
 0x13b   : > { %3656 = vmatmul.mubr.bf16.vlgmr.msra.gmra.mrb[8].mxu1 %v6426_v40  ;;  %3665 = vmatpush1.bf16.msra.mxu0 %v5221_v35  ;;  %v5293_v35 = vld [vmem:[%s6137_s1 + $0xd80] ss:$16 sps:$4 sm:$0xff]  }
 0x13c   : > { %3706 = vmatpush1.bf16.msra.mxu1 %v5224_v36  ;;  %3666 = vmatprep.subr.bf16.mxu0 %v5229_v43  ;;  %v5296_v36 = vld [vmem:[%s6137_s1 + $0xf80] ss:$16 sps:$4 sm:$0xff]   ;;  %v5301_v43 = vld [vmem:[%s6137_s1 + $0xda4] ss:$16 sps:$4 sm:$0xff]  }
 0x13d   : > { %3707 = vmatprep.subr.bf16.mxu1 %v5232_v44  ;;  %3696 = vmatprep.mubr.bf16.mxu0 %v6438_v23  ;;  %v5304_v44 = vld [vmem:[%s6137_s1 + $0xfa4] ss:$16 sps:$4 sm:$0xff]  }
 0x13e   : > { %3737 = vmatprep.mubr.bf16.mxu1 %v6442_v24 }
 0x13f   : > { %3667 = vmatpush1.bf16.msra.mxu0 %v5227_v45  ;;  %v5299_v45 = vld [vmem:[%s6137_s1 + $0xda0] ss:$16 sps:$4 sm:$0xff]  }
 0x140   : > { %3708 = vmatpush1.bf16.msra.mxu1 %v5230_v46  ;;  %3668 = vmatprep.subr.bf16.mxu0 %v5235_v47  ;;  %v5302_v46 = vld [vmem:[%s6137_s1 + $0xfa0] ss:$16 sps:$4 sm:$0xff]   ;;  %v5307_v47 = vld [vmem:[%s6137_s1 + $0xdc4] ss:$16 sps:$4 sm:$0xff]  }
 0x141   : > { %3709 = vmatprep.subr.bf16.mxu1 %v5238_v49  ;;  %v5310_v49 = vld [vmem:[%s6137_s1 + $0xfc4] ss:$16 sps:$4 sm:$0xff]  }
 0x143   : > { %3669 = vmatpush1.bf16.msra.mxu0 %v5233_v50  ;;  %v5305_v50 = vld [vmem:[%s6137_s1 + $0xdc0] ss:$16 sps:$4 sm:$0xff]  }
 0x144   : > { %3710 = vmatpush1.bf16.msra.mxu1 %v5236_v51  ;;  %3670 = vmatprep.subr.bf16.mxu0 %v5241_v53  ;;  %v5308_v51 = vld [vmem:[%s6137_s1 + $0xfc0] ss:$16 sps:$4 sm:$0xff]   ;;  %v5313_v53 = vld [vmem:[%s6137_s1 + $0xde4] ss:$16 sps:$4 sm:$0xff]  }
 0x145   : > { %3711 = vmatprep.subr.bf16.mxu1 %v5244_v54  ;;  %v5316_v54 = vld [vmem:[%s6137_s1 + $0xfe4] ss:$16 sps:$4 sm:$0xff]  }
 0x147   : > { %3671 = vmatpush1.bf16.msra.mxu0 %v5239_v55  ;;  %v5311_v55 = vld [vmem:[%s6137_s1 + $0xde0] ss:$16 sps:$4 sm:$0xff]  }
 0x148   : > { %3712 = vmatpush1.bf16.msra.mxu1 %v5242_v56  ;;  %3672 = vmatprep.subr.bf16.mxu0 %v5247_v57  ;;  %v5314_v56 = vld [vmem:[%s6137_s1 + $0xfe0] ss:$16 sps:$4 sm:$0xff]   ;;  %v5323_v57 = vld [vmem:[%s6137_s1 + $0xc] ss:$16 sps:$4 sm:$0xff]  }
 0x149   : > { %3713 = vmatprep.subr.bf16.mxu1 %v5250_v58  ;;  %v5326_v58 = vld [vmem:[%s6137_s1 + $0x20c] ss:$16 sps:$4 sm:$0xff]  }
 0x14b   : > { %3673 = vmatpush1.bf16.msra.mxu0 %v5245_v59  ;;  %v6510_v59 = vcombine.low %v6429_v41, %v6429_v41  ;;  %v5327_v41 = vld [vmem:[%s6137_s1 + $0x28] ss:$16 sps:$4 sm:$0xff]  }
 0x14c   : > { %3714 = vmatpush1.bf16.msra.mxu1 %v5248_v60  ;;  %3674 = vmatprep.subr.bf16.mxu0 %v5253_v61  ;;  %v6514_v60 = vcombine.low %v6432_v42, %v6432_v42  ;;  %v5321_v61 = vld [vmem:[%s6137_s1 + $0x8] ss:$16 sps:$4 sm:$0xff]   ;;  %v5335_v42 = vld [vmem:[%s6137_s1 + $0x4c] ss:$16 sps:$4 sm:$0xff]  }
 0x14d   : > { %3715 = vmatprep.subr.bf16.mxu1 %v5256_v62  ;;  %v5324_v62 = vld [vmem:[%s6137_s1 + $0x208] ss:$16 sps:$4 sm:$0xff]  }
 0x14f   : > { %3675 = vmatpush1.bf16.msra.mxu0 %v5251_v63  ;;  %v5329_v63 = vld [vmem:[%s6137_s1 + $0x2c] ss:$16 sps:$4 sm:$0xff]  }
 0x150   : > { %3716 = vmatpush1.bf16.msra.mxu1 %v5254_v0  ;;  %3676 = vmatprep.subr.bf16.mxu0 %v5259_v1  ;;  %v5332_v0 = vld [vmem:[%s6137_s1 + $0x22c] ss:$16 sps:$4 sm:$0xff]   ;;  %v5330_v1 = vld [vmem:[%s6137_s1 + $0x228] ss:$16 sps:$4 sm:$0xff]  }
 0x151   : > { %3717 = vmatprep.subr.bf16.mxu1 %v5262_v2  ;;  %v5338_v2 = vld [vmem:[%s6137_s1 + $0x24c] ss:$16 sps:$4 sm:$0xff]  }
 0x153   : > { %3677 = vmatpush1.bf16.msra.mxu0 %v5257_v3  ;;  %v5333_v3 = vld [vmem:[%s6137_s1 + $0x48] ss:$16 sps:$4 sm:$0xff]  }
 0x154   : > { %3718 = vmatpush1.bf16.msra.mxu1 %v5260_v4  ;;  %3678 = vmatprep.subr.bf16.mxu0 %v5265_v5  ;;  %v5336_v4 = vld [vmem:[%s6137_s1 + $0x248] ss:$16 sps:$4 sm:$0xff]   ;;  %v5341_v5 = vld [vmem:[%s6137_s1 + $0x6c] ss:$16 sps:$4 sm:$0xff]  }
 0x155   : > { %3719 = vmatprep.subr.bf16.mxu1 %v5268_v6  ;;  %v5344_v6 = vld [vmem:[%s6137_s1 + $0x26c] ss:$16 sps:$4 sm:$0xff]  }
 0x157   : > { %3679 = vmatpush1.bf16.msra.mxu0 %v5263_v9  ;;  %v5342_v9 = vld [vmem:[%s6137_s1 + $0x268] ss:$16 sps:$4 sm:$0xff]  }
 0x158   : > { %3720 = vmatpush1.bf16.msra.mxu1 %v5266_v10  ;;  %3680 = vmatprep.subr.bf16.mxu0 %v5271_v11  ;;  %v5350_v10 = vld [vmem:[%s6137_s1 + $0x28c] ss:$16 sps:$4 sm:$0xff]   ;;  %v5345_v11 = vld [vmem:[%s6137_s1 + $0x88] ss:$16 sps:$4 sm:$0xff]  }
 0x159   : > { %3721 = vmatprep.subr.bf16.mxu1 %v5274_v12  ;;  %v5348_v12 = vld [vmem:[%s6137_s1 + $0x288] ss:$16 sps:$4 sm:$0xff]  }
 0x15b   : > { %3681 = vmatpush1.bf16.msra.mxu0 %v5269_v13  ;;  %v5353_v13 = vld [vmem:[%s6137_s1 + $0xac] ss:$16 sps:$4 sm:$0xff]  }
 0x15c   : > { %3722 = vmatpush1.bf16.msra.mxu1 %v5272_v14  ;;  %3682 = vmatprep.subr.bf16.mxu0 %v5277_v15  ;;  %v5356_v14 = vld [vmem:[%s6137_s1 + $0x2ac] ss:$16 sps:$4 sm:$0xff]   ;;  %v5351_v15 = vld [vmem:[%s6137_s1 + $0xa8] ss:$16 sps:$4 sm:$0xff]  }
 0x15d   : > { %3723 = vmatprep.subr.bf16.mxu1 %v5280_v16  ;;  %v5354_v16 = vld [vmem:[%s6137_s1 + $0x2a8] ss:$16 sps:$4 sm:$0xff]  }
 0x15f   : > { %3683 = vmatpush1.bf16.msra.mxu0 %v5275_v19  ;;  %v5359_v19 = vld [vmem:[%s6137_s1 + $0xcc] ss:$16 sps:$4 sm:$0xff]  }
 0x160   : > { %3724 = vmatpush1.bf16.msra.mxu1 %v5278_v20  ;;  %3684 = vmatprep.subr.bf16.mxu0 %v5283_v21  ;;  %v5362_v20 = vld [vmem:[%s6137_s1 + $0x2cc] ss:$16 sps:$4 sm:$0xff]  }
 0x161   : > { %3725 = vmatprep.subr.bf16.mxu1 %v5286_v22 }
 0x163   : > { %3685 = vmatpush1.bf16.msra.mxu0 %v5281_v27  ;;  %v5357_v27 = vld [vmem:[%s6137_s1 + $0xc8] ss:$16 sps:$4 sm:$0xff]  }
 0x164   : > { %3726 = vmatpush1.bf16.msra.mxu1 %v5284_v28  ;;  %3686 = vmatprep.subr.bf16.mxu0 %v5289_v29  ;;  %v5360_v28 = vld [vmem:[%s6137_s1 + $0x2c8] ss:$16 sps:$4 sm:$0xff]  }
 0x165   : > { %3727 = vmatprep.subr.bf16.mxu1 %v5292_v30 }
 0x167   : > { %3687 = vmatpush1.bf16.msra.mxu0 %v5287_v31 }
 0x168   : > { %3728 = vmatpush1.bf16.msra.mxu1 %v5290_v32  ;;  %3688 = vmatprep.subr.bf16.mxu0 %v5295_v33 }
 0x169   : > { %3729 = vmatprep.subr.bf16.mxu1 %v5298_v34 }
 0x16b   : > { %3689 = vmatpush1.bf16.msra.mxu0 %v5293_v35 }
 0x16c   : > { %3730 = vmatpush1.bf16.msra.mxu1 %v5296_v36  ;;  %3690 = vmatprep.subr.bf16.mxu0 %v5301_v43  ;;  %v5365_v43 = vld [vmem:[%s6137_s1 + $0xec] ss:$16 sps:$4 sm:$0xff]  }
 0x16d   : > { %3731 = vmatprep.subr.bf16.mxu1 %v5304_v44  ;;  %v5368_v44 = vld [vmem:[%s6137_s1 + $0x2ec] ss:$16 sps:$4 sm:$0xff]  }
 0x16f   : > { %3691 = vmatpush1.bf16.msra.mxu0 %v5299_v45  ;;  %v5363_v45 = vld [vmem:[%s6137_s1 + $0xe8] ss:$16 sps:$4 sm:$0xff]  }
 0x170   : > { %3732 = vmatpush1.bf16.msra.mxu1 %v5302_v46  ;;  %3692 = vmatprep.subr.bf16.mxu0 %v5307_v47  ;;  %v5366_v46 = vld [vmem:[%s6137_s1 + $0x2e8] ss:$16 sps:$4 sm:$0xff]   ;;  %v5371_v47 = vld [vmem:[%s6137_s1 + $0x10c] ss:$16 sps:$4 sm:$0xff]  }
 0x171   : > { %3733 = vmatprep.subr.bf16.mxu1 %v5310_v49  ;;  %v5374_v49 = vld [vmem:[%s6137_s1 + $0x30c] ss:$16 sps:$4 sm:$0xff]  }
 0x173   : > { %3693 = vmatpush1.bf16.msra.mxu0 %v5305_v50  ;;  %v5369_v50 = vld [vmem:[%s6137_s1 + $0x108] ss:$16 sps:$4 sm:$0xff]  }
 0x174   : > { %3734 = vmatpush1.bf16.msra.mxu1 %v5308_v51  ;;  %3694 = vmatprep.subr.bf16.mxu0 %v5313_v53  ;;  %v5372_v51 = vld [vmem:[%s6137_s1 + $0x308] ss:$16 sps:$4 sm:$0xff]   ;;  %v5377_v53 = vld [vmem:[%s6137_s1 + $0x12c] ss:$16 sps:$4 sm:$0xff]  }
 0x175   : > { %3735 = vmatprep.subr.bf16.mxu1 %v5316_v54  ;;  %v5380_v54 = vld [vmem:[%s6137_s1 + $0x32c] ss:$16 sps:$4 sm:$0xff]  }
 0x177   : > { %3695 = vmatpush1.bf16.msra.mxu0 %v5311_v55  ;;  %v5375_v55 = vld [vmem:[%s6137_s1 + $0x128] ss:$16 sps:$4 sm:$0xff]  }
 0x178   : > { %3736 = vmatpush1.bf16.msra.mxu1 %v5314_v56  ;;  %3746 = vmatprep.subr.bf16.mxu0 %v5323_v57  ;;  %v5378_v56 = vld [vmem:[%s6137_s1 + $0x328] ss:$16 sps:$4 sm:$0xff]   ;;  %v5383_v57 = vld [vmem:[%s6137_s1 + $0x14c] ss:$16 sps:$4 sm:$0xff]  }
 0x179   : > { %3787 = vmatprep.subr.bf16.mxu1 %v5326_v58  ;;  %v5386_v58 = vld [vmem:[%s6137_s1 + $0x34c] ss:$16 sps:$4 sm:$0xff]  }
 0x17a   : > { %3697 = vmatmul.mubr.bf16.vlgmr.msra.gmra.mrb[12].mxu0 %v6510_v59 }
 0x17b   : > { %3738 = vmatmul.mubr.bf16.vlgmr.msra.gmra.mrb[12].mxu1 %v6514_v60  ;;  %3747 = vmatpush1.bf16.msra.mxu0 %v5321_v61  ;;  %v5381_v61 = vld [vmem:[%s6137_s1 + $0x148] ss:$16 sps:$4 sm:$0xff]  }
 0x17c   : > { %3788 = vmatpush1.bf16.msra.mxu1 %v5324_v62  ;;  %3748 = vmatprep.subr.bf16.mxu0 %v5329_v63  ;;  %v5384_v62 = vld [vmem:[%s6137_s1 + $0x348] ss:$16 sps:$4 sm:$0xff]   ;;  %v5389_v63 = vld [vmem:[%s6137_s1 + $0x16c] ss:$16 sps:$4 sm:$0xff]  }
 0x17d   : > { %3789 = vmatprep.subr.bf16.mxu1 %v5332_v0  ;;  %3778 = vmatprep.mubr.bf16.mxu0 %v6215_v48  ;;  %v5339_v48 = vld [vmem:[%s6137_s1 + $0x68] ss:$16 sps:$4 sm:$0xff]   ;;  %v5392_v0 = vld [vmem:[%s6137_s1 + $0x36c] ss:$16 sps:$4 sm:$0xff]  }
 0x17e   : > { %3819 = vmatprep.mubr.bf16.mxu1 %v6220_v52  ;;  %v5347_v52 = vld [vmem:[%s6137_s1 + $0x8c] ss:$16 sps:$4 sm:$0xff]  }
 0x17f   : > { %3749 = vmatpush1.bf16.msra.mxu0 %v5327_v41  ;;  %v5387_v41 = vld [vmem:[%s6137_s1 + $0x168] ss:$16 sps:$4 sm:$0xff]  }
 0x180   : > { %3790 = vmatpush1.bf16.msra.mxu1 %v5330_v1  ;;  %3750 = vmatprep.subr.bf16.mxu0 %v5335_v42  ;;  %v5390_v1 = vld [vmem:[%s6137_s1 + $0x368] ss:$16 sps:$4 sm:$0xff]   ;;  %v5395_v42 = vld [vmem:[%s6137_s1 + $0x18c] ss:$16 sps:$4 sm:$0xff]  }
 0x181   : > { %3791 = vmatprep.subr.bf16.mxu1 %v5338_v2  ;;  %v5398_v2 = vld [vmem:[%s6137_s1 + $0x38c] ss:$16 sps:$4 sm:$0xff]  }
 0x183   : > { %3751 = vmatpush1.bf16.msra.mxu0 %v5333_v3  ;;  %v5393_v3 = vld [vmem:[%s6137_s1 + $0x188] ss:$16 sps:$4 sm:$0xff]  }
 0x184   : > { %3792 = vmatpush1.bf16.msra.mxu1 %v5336_v4  ;;  %3752 = vmatprep.subr.bf16.mxu0 %v5341_v5  ;;  %v5396_v4 = vld [vmem:[%s6137_s1 + $0x388] ss:$16 sps:$4 sm:$0xff]   ;;  %v5401_v5 = vld [vmem:[%s6137_s1 + $0x1ac] ss:$16 sps:$4 sm:$0xff]  }
 0x185   : > { %3793 = vmatprep.subr.bf16.mxu1 %v5344_v6  ;;  %v5404_v6 = vld [vmem:[%s6137_s1 + $0x3ac] ss:$16 sps:$4 sm:$0xff]  }
 0x187   : > { %3753 = vmatpush1.bf16.msra.mxu0 %v5339_v48  ;;  %v5399_v48 = vld [vmem:[%s6137_s1 + $0x1a8] ss:$16 sps:$4 sm:$0xff]  }
 0x188   : > { %3794 = vmatpush1.bf16.msra.mxu1 %v5342_v9  ;;  %3754 = vmatprep.subr.bf16.mxu0 %v5347_v52  ;;  %v5402_v9 = vld [vmem:[%s6137_s1 + $0x3a8] ss:$16 sps:$4 sm:$0xff]   ;;  %v5407_v52 = vld [vmem:[%s6137_s1 + $0x1cc] ss:$16 sps:$4 sm:$0xff]  }
 0x189   : > { %3795 = vmatprep.subr.bf16.mxu1 %v5350_v10  ;;  %v5410_v10 = vld [vmem:[%s6137_s1 + $0x3cc] ss:$16 sps:$4 sm:$0xff]  }
 0x18b   : > { %3755 = vmatpush1.bf16.msra.mxu0 %v5345_v11  ;;  %v5405_v11 = vld [vmem:[%s6137_s1 + $0x1c8] ss:$16 sps:$4 sm:$0xff]  }
 0x18c   : > { %3796 = vmatpush1.bf16.msra.mxu1 %v5348_v12  ;;  %3756 = vmatprep.subr.bf16.mxu0 %v5353_v13  ;;  %v5408_v12 = vld [vmem:[%s6137_s1 + $0x3c8] ss:$16 sps:$4 sm:$0xff]   ;;  %v5413_v13 = vld [vmem:[%s6137_s1 + $0x1ec] ss:$16 sps:$4 sm:$0xff]  }
 0x18d   : > { %3797 = vmatprep.subr.bf16.mxu1 %v5356_v14  ;;  %v3452_v21 = vpop.f32.mrb[0].mxu0  ;;  %v5416_v14 = vld [vmem:[%s6137_s1 + $0x3ec] ss:$16 sps:$4 sm:$0xff]  }
 0x18e   : > { %v3493_v22 = vpop.f32.mrb[0].mxu1  ;;  %v3454_v30 = vpop.f32.mrb[1].mxu0 }
 0x18f   : > { %v6546_v29 = vadd.f32 %v3493_v22, %v3452_v21  ;;  %v3495_v31 = vpop.f32.mrb[1].mxu1  ;;  %v3456_v33 = vpop.f32.mrb[2].mxu0  ;;  %3757 = vmatpush1.bf16.msra.mxu0 %v5351_v15  ;;  %v5411_v15 = vld [vmem:[%s6137_s1 + $0x1e8] ss:$16 sps:$4 sm:$0xff]  }
 0x190   : > { %v6548_v32 = vadd.f32 %v3495_v31, %v3454_v30  ;;  %v3497_v34 = vpop.f32.mrb[2].mxu1  ;;  %3798 = vmatpush1.bf16.msra.mxu1 %v5354_v16  ;;  %v3457_v35 = vpop.f32.mrb[3].mxu0  ;;  %3758 = vmatprep.subr.bf16.mxu0 %v5359_v19  ;;  %v5414_v16 = vld [vmem:[%s6137_s1 + $0x3e8] ss:$16 sps:$4 sm:$0xff]   ;;  %v5419_v19 = vld [vmem:[%s6137_s1 + $0x40c] ss:$16 sps:$4 sm:$0xff]  }
 0x191   : > { %v3498_v36 = vpop.f32.mrb[3].mxu1  ;;  %3799 = vmatprep.subr.bf16.mxu1 %v5362_v20  ;;  %v5422_v20 = vld [vmem:[%s6137_s1 + $0x60c] ss:$16 sps:$4 sm:$0xff]   ;;  %v5417_v21 = vld [vmem:[%s6137_s1 + $0x408] ss:$16 sps:$4 sm:$0xff]  }
 0x192   : > { %v5420_v22 = vld [vmem:[%s6137_s1 + $0x608] ss:$16 sps:$4 sm:$0xff]   ;;  %v5431_v33 = vld [vmem:[%s6137_s1 + $0x44c] ss:$16 sps:$4 sm:$0xff]  }
 0x193   : > { %3759 = vmatpush1.bf16.msra.mxu0 %v5357_v27  ;;  %v5425_v27 = vld [vmem:[%s6137_s1 + $0x42c] ss:$16 sps:$4 sm:$0xff]   ;;  %v5423_v30 = vld [vmem:[%s6137_s1 + $0x428] ss:$16 sps:$4 sm:$0xff]  }
 0x194   : > { %3800 = vmatpush1.bf16.msra.mxu1 %v5360_v28  ;;  %3760 = vmatprep.subr.bf16.mxu0 %v5365_v43  ;;  %v5428_v28 = vld [vmem:[%s6137_s1 + $0x62c] ss:$16 sps:$4 sm:$0xff]   ;;  %v5426_v31 = vld [vmem:[%s6137_s1 + $0x628] ss:$16 sps:$4 sm:$0xff]  }
 0x195   : > { %3801 = vmatprep.subr.bf16.mxu1 %v5368_v44  ;;  %v5434_v34 = vld [vmem:[%s6137_s1 + $0x64c] ss:$16 sps:$4 sm:$0xff]   ;;  %v5435_v43 = vld [vmem:[%s6137_s1 + $0x468] ss:$16 sps:$4 sm:$0xff]  }
 0x196   : > { %v5437_v35 = vld [vmem:[%s6137_s1 + $0x46c] ss:$16 sps:$4 sm:$0xff]  }
 0x197   : > { %3761 = vmatpush1.bf16.msra.mxu0 %v5363_v45  ;;  %v5440_v36 = vld [vmem:[%s6137_s1 + $0x66c] ss:$16 sps:$4 sm:$0xff]   ;;  %v5441_v45 = vld [vmem:[%s6137_s1 + $0x488] ss:$16 sps:$4 sm:$0xff]  }
 0x198   : > { %3802 = vmatpush1.bf16.msra.mxu1 %v5366_v46  ;;  %3762 = vmatprep.subr.bf16.mxu0 %v5371_v47  ;;  %v5446_v44 = vld [vmem:[%s6137_s1 + $0x68c] ss:$16 sps:$4 sm:$0xff]   ;;  %v5444_v46 = vld [vmem:[%s6137_s1 + $0x688] ss:$16 sps:$4 sm:$0xff]  }
 0x199   : > { %3803 = vmatprep.subr.bf16.mxu1 %v5374_v49  ;;  %v5449_v47 = vld [vmem:[%s6137_s1 + $0x4ac] ss:$16 sps:$4 sm:$0xff]  }
 0x19a   : > { %v5452_v49 = vld [vmem:[%s6137_s1 + $0x6ac] ss:$16 sps:$4 sm:$0xff]  }
 0x19b   : > { %3763 = vmatpush1.bf16.msra.mxu0 %v5369_v50  ;;  %v5447_v50 = vld [vmem:[%s6137_s1 + $0x4a8] ss:$16 sps:$4 sm:$0xff]  }
 0x19c   : > { %3804 = vmatpush1.bf16.msra.mxu1 %v5372_v51  ;;  %3764 = vmatprep.subr.bf16.mxu0 %v5377_v53  ;;  %v5450_v51 = vld [vmem:[%s6137_s1 + $0x6a8] ss:$16 sps:$4 sm:$0xff]   ;;  %v5455_v53 = vld [vmem:[%s6137_s1 + $0x4cc] ss:$16 sps:$4 sm:$0xff]  }
 0x19d   : > { %3805 = vmatprep.subr.bf16.mxu1 %v5380_v54  ;;  %v5458_v54 = vld [vmem:[%s6137_s1 + $0x6cc] ss:$16 sps:$4 sm:$0xff]  }
 0x19f   : > { %3765 = vmatpush1.bf16.msra.mxu0 %v5375_v55 }
 0x1a0   : > { %3806 = vmatpush1.bf16.msra.mxu1 %v5378_v56  ;;  %3766 = vmatprep.subr.bf16.mxu0 %v5383_v57 }
 0x1a1   : > { %3807 = vmatprep.subr.bf16.mxu1 %v5386_v58 }
 0x1a3   : > { %3767 = vmatpush1.bf16.msra.mxu0 %v5381_v61 }
 0x1a4   : > { %3808 = vmatpush1.bf16.msra.mxu1 %v5384_v62  ;;  %3768 = vmatprep.subr.bf16.mxu0 %v5389_v63 }
 0x1a5   : > { %3809 = vmatprep.subr.bf16.mxu1 %v5392_v0 }
 0x1a7   : > { %3769 = vmatpush1.bf16.msra.mxu0 %v5387_v41  ;;  %v5453_v41 = vld [vmem:[%s6137_s1 + $0x4c8] ss:$16 sps:$4 sm:$0xff]  }
 0x1a8   : > { %3810 = vmatpush1.bf16.msra.mxu1 %v5390_v1  ;;  %3770 = vmatprep.subr.bf16.mxu0 %v5395_v42  ;;  %v5456_v1 = vld [vmem:[%s6137_s1 + $0x6c8] ss:$16 sps:$4 sm:$0xff]  }
 0x1a9   : > { %3811 = vmatprep.subr.bf16.mxu1 %v5398_v2 }
 0x1ab   : > { %3771 = vmatpush1.bf16.msra.mxu0 %v5393_v3 }
 0x1ac   : > { %3812 = vmatpush1.bf16.msra.mxu1 %v5396_v4  ;;  %3772 = vmatprep.subr.bf16.mxu0 %v5401_v5  ;;  %v5459_v5 = vld [vmem:[%s6137_s1 + $0x4e8] ss:$16 sps:$4 sm:$0xff]  }
 0x1ad   : > { %3813 = vmatprep.subr.bf16.mxu1 %v5404_v6  ;;  %v5462_v6 = vld [vmem:[%s6137_s1 + $0x6e8] ss:$16 sps:$4 sm:$0xff]  }
 0x1af   : > { %3773 = vmatpush1.bf16.msra.mxu0 %v5399_v48  ;;  %v5467_v48 = vld [vmem:[%s6137_s1 + $0x50c] ss:$16 sps:$4 sm:$0xff]  }
 0x1b0   : > { %3814 = vmatpush1.bf16.msra.mxu1 %v5402_v9  ;;  %3774 = vmatprep.subr.bf16.mxu0 %v5407_v52  ;;  %v5470_v9 = vld [vmem:[%s6137_s1 + $0x70c] ss:$16 sps:$4 sm:$0xff]   ;;  %v5465_v52 = vld [vmem:[%s6137_s1 + $0x508] ss:$16 sps:$4 sm:$0xff]  }
 0x1b1   : > { %3815 = vmatprep.subr.bf16.mxu1 %v5410_v10  ;;  %v5468_v10 = vld [vmem:[%s6137_s1 + $0x708] ss:$16 sps:$4 sm:$0xff]  }
 0x1b3   : > { %3775 = vmatpush1.bf16.msra.mxu0 %v5405_v11  ;;  %v5473_v11 = vld [vmem:[%s6137_s1 + $0x52c] ss:$16 sps:$4 sm:$0xff]  }
 0x1b4   : > { %3816 = vmatpush1.bf16.msra.mxu1 %v5408_v12  ;;  %3776 = vmatprep.subr.bf16.mxu0 %v5413_v13  ;;  %v5476_v12 = vld [vmem:[%s6137_s1 + $0x72c] ss:$16 sps:$4 sm:$0xff]   ;;  %v5471_v13 = vld [vmem:[%s6137_s1 + $0x528] ss:$16 sps:$4 sm:$0xff]  }
 0x1b5   : > { %3817 = vmatprep.subr.bf16.mxu1 %v5416_v14  ;;  %v5474_v14 = vld [vmem:[%s6137_s1 + $0x728] ss:$16 sps:$4 sm:$0xff]  }
 0x1b7   : > { %3777 = vmatpush1.bf16.msra.mxu0 %v5411_v15  ;;  %v5479_v15 = vld [vmem:[%s6137_s1 + $0x54c] ss:$16 sps:$4 sm:$0xff]  }
 0x1b8   : > { %3818 = vmatpush1.bf16.msra.mxu1 %v5414_v16  ;;  %3828 = vmatprep.subr.bf16.mxu0 %v5419_v19  ;;  %v5482_v16 = vld [vmem:[%s6137_s1 + $0x74c] ss:$16 sps:$4 sm:$0xff]   ;;  %v5477_v19 = vld [vmem:[%s6137_s1 + $0x548] ss:$16 sps:$4 sm:$0xff]  }
 0x1b9   : > { %3869 = vmatprep.subr.bf16.mxu1 %v5422_v20  ;;  %v5480_v20 = vld [vmem:[%s6137_s1 + $0x748] ss:$16 sps:$4 sm:$0xff]  }
 0x1ba   : > { %3779 = vmatmul.mubr.bf16.vlgmr.msra.gmra.mrb[16].mxu0 %v6242_v7  ;;  %v5429_v7 = vld [vmem:[%s6137_s1 + $0x448] ss:$16 sps:$4 sm:$0xff]  }
 0x1bb   : > { %3820 = vmatmul.mubr.bf16.vlgmr.msra.gmra.mrb[16].mxu1 %v6244_v8  ;;  %3829 = vmatpush1.bf16.msra.mxu0 %v5417_v21  ;;  %v5432_v8 = vld [vmem:[%s6137_s1 + $0x648] ss:$16 sps:$4 sm:$0xff]   ;;  %v5485_v21 = vld [vmem:[%s6137_s1 + $0x56c] ss:$16 sps:$4 sm:$0xff]  }
 0x1bc   : > { %3870 = vmatpush1.bf16.msra.mxu1 %v5420_v22  ;;  %3830 = vmatprep.subr.bf16.mxu0 %v5425_v27  ;;  %v5488_v22 = vld [vmem:[%s6137_s1 + $0x76c] ss:$16 sps:$4 sm:$0xff]   ;;  %v5483_v27 = vld [vmem:[%s6137_s1 + $0x568] ss:$16 sps:$4 sm:$0xff]  }
 0x1bd   : > { %3871 = vmatprep.subr.bf16.mxu1 %v5428_v28  ;;  %3860 = vmatprep.mubr.bf16.mxu0 %v6282_v37  ;;  %v5438_v37 = vld [vmem:[%s6137_s1 + $0x668] ss:$16 sps:$4 sm:$0xff]  }
 0x1be   : > { %3901 = vmatprep.mubr.bf16.mxu1 %v6286_v38  ;;  %v5443_v38 = vld [vmem:[%s6137_s1 + $0x48c] ss:$16 sps:$4 sm:$0xff]   ;;  %v5486_v28 = vld [vmem:[%s6137_s1 + $0x768] ss:$16 sps:$4 sm:$0xff]  }
 0x1bf   : > { %3831 = vmatpush1.bf16.msra.mxu0 %v5423_v30  ;;  %v5491_v30 = vld [vmem:[%s6137_s1 + $0x58c] ss:$16 sps:$4 sm:$0xff]  }
 0x1c0   : > { %3872 = vmatpush1.bf16.msra.mxu1 %v5426_v31  ;;  %3832 = vmatprep.subr.bf16.mxu0 %v5431_v33  ;;  %v5494_v31 = vld [vmem:[%s6137_s1 + $0x78c] ss:$16 sps:$4 sm:$0xff]   ;;  %v5489_v33 = vld [vmem:[%s6137_s1 + $0x588] ss:$16 sps:$4 sm:$0xff]  }
 0x1c1   : > { %3873 = vmatprep.subr.bf16.mxu1 %v5434_v34  ;;  %v5492_v34 = vld [vmem:[%s6137_s1 + $0x788] ss:$16 sps:$4 sm:$0xff]  }
 0x1c3   : > { %3833 = vmatpush1.bf16.msra.mxu0 %v5429_v7  ;;  %v5497_v7 = vld [vmem:[%s6137_s1 + $0x5ac] ss:$16 sps:$4 sm:$0xff]  }
 0x1c4   : > { %3874 = vmatpush1.bf16.msra.mxu1 %v5432_v8  ;;  %3834 = vmatprep.subr.bf16.mxu0 %v5437_v35  ;;  %v5500_v8 = vld [vmem:[%s6137_s1 + $0x7ac] ss:$16 sps:$4 sm:$0xff]   ;;  %v5495_v35 = vld [vmem:[%s6137_s1 + $0x5a8] ss:$16 sps:$4 sm:$0xff]  }
 0x1c5   : > { %3875 = vmatprep.subr.bf16.mxu1 %v5440_v36  ;;  %v5498_v36 = vld [vmem:[%s6137_s1 + $0x7a8] ss:$16 sps:$4 sm:$0xff]  }
 0x1c7   : > { %3835 = vmatpush1.bf16.msra.mxu0 %v5435_v43  ;;  %v5503_v43 = vld [vmem:[%s6137_s1 + $0x5cc] ss:$16 sps:$4 sm:$0xff]  }
 0x1c8   : > { %3876 = vmatpush1.bf16.msra.mxu1 %v5438_v37  ;;  %3836 = vmatprep.subr.bf16.mxu0 %v5443_v38  ;;  %v5506_v37 = vld [vmem:[%s6137_s1 + $0x7cc] ss:$16 sps:$4 sm:$0xff]   ;;  %v5501_v38 = vld [vmem:[%s6137_s1 + $0x5c8] ss:$16 sps:$4 sm:$0xff]  }
 0x1c9   : > { %3877 = vmatprep.subr.bf16.mxu1 %v5446_v44  ;;  %v5504_v44 = vld [vmem:[%s6137_s1 + $0x7c8] ss:$16 sps:$4 sm:$0xff]  }
 0x1cb   : > { %3837 = vmatpush1.bf16.msra.mxu0 %v5441_v45  ;;  %v5509_v45 = vld [vmem:[%s6137_s1 + $0x5ec] ss:$16 sps:$4 sm:$0xff]  }
 0x1cc   : > { %3878 = vmatpush1.bf16.msra.mxu1 %v5444_v46  ;;  %3838 = vmatprep.subr.bf16.mxu0 %v5449_v47  ;;  %v5512_v46 = vld [vmem:[%s6137_s1 + $0x7ec] ss:$16 sps:$4 sm:$0xff]   ;;  %v5507_v47 = vld [vmem:[%s6137_s1 + $0x5e8] ss:$16 sps:$4 sm:$0xff]  }
 0x1cd   : > { %3879 = vmatprep.subr.bf16.mxu1 %v5452_v49  ;;  %v3534_v55 = vpop.f32.mrb[4].mxu0  ;;  %v5510_v49 = vld [vmem:[%s6137_s1 + $0x7e8] ss:$16 sps:$4 sm:$0xff]  }
 0x1ce   : > { %v3575_v56 = vpop.f32.mrb[4].mxu1  ;;  %v3535_v57 = vadd.f32 %v3534_v55, %v6546_v29  ;;  %v3536_v58 = vpop.f32.mrb[5].mxu0  ;;  %v5461_v29 = vld [vmem:[%s6137_s1 + $0x4ec] ss:$16 sps:$4 sm:$0xff]  }
 0x1cf   : > { %v3577_v61 = vpop.f32.mrb[5].mxu1  ;;  %v3537_v62 = vadd.f32 %v3536_v58, %v6548_v32  ;;  %v3538_v63 = vpop.f32.mrb[6].mxu0  ;;  %3839 = vmatpush1.bf16.msra.mxu0 %v5447_v50  ;;  %v5464_v32 = vld [vmem:[%s6137_s1 + $0x6ec] ss:$16 sps:$4 sm:$0xff]   ;;  %v5522_v58 = vld [vmem:[%s6137_s1 + $0xa28] ss:$16 sps:$4 sm:$0xff]  }
 0x1d0   : > { %v3579_v0 = vpop.f32.mrb[6].mxu1  ;;  %3880 = vmatpush1.bf16.msra.mxu1 %v5450_v51  ;;  %v6620_v42 = vadd.f32 %v3575_v56, %v3535_v57  ;;  %v3539_v2 = vpop.f32.mrb[7].mxu0  ;;  %3840 = vmatprep.subr.bf16.mxu0 %v5455_v53  ;;  %v5515_v50 = vld [vmem:[%s6137_s1 + $0x80c] ss:$16 sps:$4 sm:$0xff]   ;;  %v5513_v53 = vld [vmem:[%s6137_s1 + $0x808] ss:$16 sps:$4 sm:$0xff]  }
 0x1d1   : > { %v3580_v3 = vpop.f32.mrb[7].mxu1  ;;  %3881 = vmatprep.subr.bf16.mxu1 %v5458_v54  ;;  %v6624_v4 = vadd.f32 %v3577_v61, %v3537_v62  ;;  %v5518_v51 = vld [vmem:[%s6137_s1 + $0xa0c] ss:$16 sps:$4 sm:$0xff]   ;;  %v5516_v54 = vld [vmem:[%s6137_s1 + $0xa08] ss:$16 sps:$4 sm:$0xff]  }
 0x1d2   : > { %v5521_v55 = vld [vmem:[%s6137_s1 + $0x82c] ss:$16 sps:$4 sm:$0xff]   ;;  %v5519_v57 = vld [vmem:[%s6137_s1 + $0x828] ss:$16 sps:$4 sm:$0xff]  }
 0x1d3   : > { %3841 = vmatpush1.bf16.msra.mxu0 %v5453_v41  ;;  %v5524_v56 = vld [vmem:[%s6137_s1 + $0xa2c] ss:$16 sps:$4 sm:$0xff]   ;;  %v5531_v41 = vld [vmem:[%s6137_s1 + $0x868] ss:$16 sps:$4 sm:$0xff]  }
 0x1d4   : > { %3882 = vmatpush1.bf16.msra.mxu1 %v5456_v1  ;;  %3842 = vmatprep.subr.bf16.mxu0 %v5461_v29  ;;  %v5527_v61 = vld [vmem:[%s6137_s1 + $0x84c] ss:$16 sps:$4 sm:$0xff]   ;;  %v5537_v2 = vld [vmem:[%s6137_s1 + $0x888] ss:$16 sps:$4 sm:$0xff]  }
 0x1d5   : > { %3883 = vmatprep.subr.bf16.mxu1 %v5464_v32  ;;  %v5530_v62 = vld [vmem:[%s6137_s1 + $0xa4c] ss:$16 sps:$4 sm:$0xff]   ;;  %v5540_v3 = vld [vmem:[%s6137_s1 + $0xa88] ss:$16 sps:$4 sm:$0xff]  }
 0x1d6   : > { %v5533_v63 = vld [vmem:[%s6137_s1 + $0x86c] ss:$16 sps:$4 sm:$0xff]  }
 0x1d7   : > { %3843 = vmatpush1.bf16.msra.mxu0 %v5459_v5  ;;  %v5536_v0 = vld [vmem:[%s6137_s1 + $0xa6c] ss:$16 sps:$4 sm:$0xff]   ;;  %v5543_v5 = vld [vmem:[%s6137_s1 + $0x8a8] ss:$16 sps:$4 sm:$0xff]  }
 0x1d8   : > { %3884 = vmatpush1.bf16.msra.mxu1 %v5462_v6  ;;  %3844 = vmatprep.subr.bf16.mxu0 %v5467_v48  ;;  %v5542_v1 = vld [vmem:[%s6137_s1 + $0xa8c] ss:$16 sps:$4 sm:$0xff]   ;;  %v5546_v6 = vld [vmem:[%s6137_s1 + $0xaa8] ss:$16 sps:$4 sm:$0xff]  }
 0x1d9   : > { %3885 = vmatprep.subr.bf16.mxu1 %v5470_v9  ;;  %v5545_v29 = vld [vmem:[%s6137_s1 + $0x8ac] ss:$16 sps:$4 sm:$0xff]  }
 0x1da   : > { %v5548_v32 = vld [vmem:[%s6137_s1 + $0xaac] ss:$16 sps:$4 sm:$0xff]  }
 0x1db   : > { %3845 = vmatpush1.bf16.msra.mxu0 %v5465_v52  ;;  %v5551_v48 = vld [vmem:[%s6137_s1 + $0x8cc] ss:$16 sps:$4 sm:$0xff]  }
 0x1dc   : > { %3886 = vmatpush1.bf16.msra.mxu1 %v5468_v10  ;;  %3846 = vmatprep.subr.bf16.mxu0 %v5473_v11  ;;  %v5554_v9 = vld [vmem:[%s6137_s1 + $0xacc] ss:$16 sps:$4 sm:$0xff]  }
 0x1dd   : > { %3887 = vmatprep.subr.bf16.mxu1 %v5476_v12 }
 0x1df   : > { %3847 = vmatpush1.bf16.msra.mxu0 %v5471_v13 }
 0x1e0   : > { %3888 = vmatpush1.bf16.msra.mxu1 %v5474_v14  ;;  %3848 = vmatprep.subr.bf16.mxu0 %v5479_v15 }
 0x1e1   : > { %3889 = vmatprep.subr.bf16.mxu1 %v5482_v16 }
 0x1e3   : > { %3849 = vmatpush1.bf16.msra.mxu0 %v5477_v19  ;;  %v5549_v19 = vld [vmem:[%s6137_s1 + $0x8c8] ss:$16 sps:$4 sm:$0xff]  }
 0x1e4   : > { %3890 = vmatpush1.bf16.msra.mxu1 %v5480_v20  ;;  %3850 = vmatprep.subr.bf16.mxu0 %v5485_v21  ;;  %v5552_v20 = vld [vmem:[%s6137_s1 + $0xac8] ss:$16 sps:$4 sm:$0xff]  }
 0x1e5   : > { %3891 = vmatprep.subr.bf16.mxu1 %v5488_v22 }
 0x1e7   : > { %3851 = vmatpush1.bf16.msra.mxu0 %v5483_v27 }
 0x1e8   : > { %3892 = vmatpush1.bf16.msra.mxu1 %v5486_v28  ;;  %3852 = vmatprep.subr.bf16.mxu0 %v5491_v30  ;;  %v5555_v30 = vld [vmem:[%s6137_s1 + $0x8e8] ss:$16 sps:$4 sm:$0xff]  }
 0x1e9   : > { %3893 = vmatprep.subr.bf16.mxu1 %v5494_v31  ;;  %v5558_v31 = vld [vmem:[%s6137_s1 + $0xae8] ss:$16 sps:$4 sm:$0xff]  }
 0x1eb   : > { %3853 = vmatpush1.bf16.msra.mxu0 %v5489_v33  ;;  %v5563_v33 = vld [vmem:[%s6137_s1 + $0x90c] ss:$16 sps:$4 sm:$0xff]  }
 0x1ec   : > { %3894 = vmatpush1.bf16.msra.mxu1 %v5492_v34  ;;  %3854 = vmatprep.subr.bf16.mxu0 %v5497_v7  ;;  %v5566_v34 = vld [vmem:[%s6137_s1 + $0xb0c] ss:$16 sps:$4 sm:$0xff]   ;;  %v5561_v7 = vld [vmem:[%s6137_s1 + $0x908] ss:$16 sps:$4 sm:$0xff]  }
 0x1ed   : > { %3895 = vmatprep.subr.bf16.mxu1 %v5500_v8  ;;  %v5564_v8 = vld [vmem:[%s6137_s1 + $0xb08] ss:$16 sps:$4 sm:$0xff]  }
 0x1ef   : > { %3855 = vmatpush1.bf16.msra.mxu0 %v5495_v35  ;;  %v5569_v35 = vld [vmem:[%s6137_s1 + $0x92c] ss:$16 sps:$4 sm:$0xff]  }
 0x1f0   : > { %3896 = vmatpush1.bf16.msra.mxu1 %v5498_v36  ;;  %3856 = vmatprep.subr.bf16.mxu0 %v5503_v43  ;;  %v5572_v36 = vld [vmem:[%s6137_s1 + $0xb2c] ss:$16 sps:$4 sm:$0xff]   ;;  %v5567_v43 = vld [vmem:[%s6137_s1 + $0x928] ss:$16 sps:$4 sm:$0xff]  }
 0x1f1   : > { %3897 = vmatprep.subr.bf16.mxu1 %v5506_v37  ;;  %v5570_v37 = vld [vmem:[%s6137_s1 + $0xb28] ss:$16 sps:$4 sm:$0xff]  }
 0x1f3   : > { %3857 = vmatpush1.bf16.msra.mxu0 %v5501_v38  ;;  %v5575_v38 = vld [vmem:[%s6137_s1 + $0x94c] ss:$16 sps:$4 sm:$0xff]  }
 0x1f4   : > { %3898 = vmatpush1.bf16.msra.mxu1 %v5504_v44  ;;  %3858 = vmatprep.subr.bf16.mxu0 %v5509_v45  ;;  %v5578_v44 = vld [vmem:[%s6137_s1 + $0xb4c] ss:$16 sps:$4 sm:$0xff]   ;;  %v5573_v45 = vld [vmem:[%s6137_s1 + $0x948] ss:$16 sps:$4 sm:$0xff]  }
 0x1f5   : > { %3899 = vmatprep.subr.bf16.mxu1 %v5512_v46  ;;  %v5576_v46 = vld [vmem:[%s6137_s1 + $0xb48] ss:$16 sps:$4 sm:$0xff]  }
 0x1f7   : > { %3859 = vmatpush1.bf16.msra.mxu0 %v5507_v47  ;;  %v5581_v47 = vld [vmem:[%s6137_s1 + $0x96c] ss:$16 sps:$4 sm:$0xff]  }
 0x1f8   : > { %3900 = vmatpush1.bf16.msra.mxu1 %v5510_v49  ;;  %3910 = vmatprep.subr.bf16.mxu0 %v5515_v50  ;;  %v5584_v49 = vld [vmem:[%s6137_s1 + $0xb6c] ss:$16 sps:$4 sm:$0xff]   ;;  %v5579_v50 = vld [vmem:[%s6137_s1 + $0x968] ss:$16 sps:$4 sm:$0xff]  }
 0x1f9   : > { %3951 = vmatprep.subr.bf16.mxu1 %v5518_v51  ;;  %v5582_v51 = vld [vmem:[%s6137_s1 + $0xb68] ss:$16 sps:$4 sm:$0xff]  }
 0x1fa   : > { %3861 = vmatmul.mubr.bf16.vlgmr.msra.gmra.mrb[20].mxu0 %v6330_v17  ;;  %v5525_v17 = vld [vmem:[%s6137_s1 + $0x848] ss:$16 sps:$4 sm:$0xff]  }
 0x1fb   : > { %3902 = vmatmul.mubr.bf16.vlgmr.msra.gmra.mrb[20].mxu1 %v6334_v18  ;;  %3911 = vmatpush1.bf16.msra.mxu0 %v5513_v53  ;;  %v5528_v18 = vld [vmem:[%s6137_s1 + $0xa48] ss:$16 sps:$4 sm:$0xff]   ;;  %v5587_v53 = vld [vmem:[%s6137_s1 + $0x98c] ss:$16 sps:$4 sm:$0xff]  }
 0x1fc   : > { %3952 = vmatpush1.bf16.msra.mxu1 %v5516_v54  ;;  %3912 = vmatprep.subr.bf16.mxu0 %v5521_v55  ;;  %v5590_v54 = vld [vmem:[%s6137_s1 + $0xb8c] ss:$16 sps:$4 sm:$0xff]   ;;  %v5585_v55 = vld [vmem:[%s6137_s1 + $0x988] ss:$16 sps:$4 sm:$0xff]  }
 0x1fd   : > { %3953 = vmatprep.subr.bf16.mxu1 %v5524_v56  ;;  %3942 = vmatprep.mubr.bf16.mxu0 %v6348_v25  ;;  %v5534_v25 = vld [vmem:[%s6137_s1 + $0xa68] ss:$16 sps:$4 sm:$0xff]  }
 0x1fe   : > { %3983 = vmatprep.mubr.bf16.mxu1 %v6352_v26  ;;  %v5539_v26 = vld [vmem:[%s6137_s1 + $0x88c] ss:$16 sps:$4 sm:$0xff]   ;;  %v5588_v56 = vld [vmem:[%s6137_s1 + $0xb88] ss:$16 sps:$4 sm:$0xff]  }
 0x1ff   : > { %3913 = vmatpush1.bf16.msra.mxu0 %v5519_v57  ;;  %v5593_v57 = vld [vmem:[%s6137_s1 + $0x9ac] ss:$16 sps:$4 sm:$0xff]  }
 0x200   : > { %3954 = vmatpush1.bf16.msra.mxu1 %v5522_v58  ;;  %3914 = vmatprep.subr.bf16.mxu0 %v5527_v61  ;;  %v5596_v58 = vld [vmem:[%s6137_s1 + $0xbac] ss:$16 sps:$4 sm:$0xff]   ;;  %v5591_v61 = vld [vmem:[%s6137_s1 + $0x9a8] ss:$16 sps:$4 sm:$0xff]  }
 0x201   : > { %3955 = vmatprep.subr.bf16.mxu1 %v5530_v62  ;;  %v5594_v62 = vld [vmem:[%s6137_s1 + $0xba8] ss:$16 sps:$4 sm:$0xff]  }
 0x203   : > { %3915 = vmatpush1.bf16.msra.mxu0 %v5525_v17  ;;  %v5599_v17 = vld [vmem:[%s6137_s1 + $0x9cc] ss:$16 sps:$4 sm:$0xff]  }
 0x204   : > { %3956 = vmatpush1.bf16.msra.mxu1 %v5528_v18  ;;  %3916 = vmatprep.subr.bf16.mxu0 %v5533_v63  ;;  %v5602_v18 = vld [vmem:[%s6137_s1 + $0xbcc] ss:$16 sps:$4 sm:$0xff]   ;;  %v5597_v63 = vld [vmem:[%s6137_s1 + $0x9c8] ss:$16 sps:$4 sm:$0xff]  }
 0x205   : > { %3957 = vmatprep.subr.bf16.mxu1 %v5536_v0  ;;  %v5600_v0 = vld [vmem:[%s6137_s1 + $0xbc8] ss:$16 sps:$4 sm:$0xff]  }
 0x207   : > { %3917 = vmatpush1.bf16.msra.mxu0 %v5531_v41  ;;  %v5605_v41 = vld [vmem:[%s6137_s1 + $0x9ec] ss:$16 sps:$4 sm:$0xff]  }
 0x208   : > { %3958 = vmatpush1.bf16.msra.mxu1 %v5534_v25  ;;  %3918 = vmatprep.subr.bf16.mxu0 %v5539_v26  ;;  %v5608_v25 = vld [vmem:[%s6137_s1 + $0xbec] ss:$16 sps:$4 sm:$0xff]   ;;  %v5603_v26 = vld [vmem:[%s6137_s1 + $0x9e8] ss:$16 sps:$4 sm:$0xff]  }
 0x209   : > { %3959 = vmatprep.subr.bf16.mxu1 %v5542_v1  ;;  %v5606_v1 = vld [vmem:[%s6137_s1 + $0xbe8] ss:$16 sps:$4 sm:$0xff]  }
 0x20b   : > { %3919 = vmatpush1.bf16.msra.mxu0 %v5537_v2  ;;  %v5611_v2 = vld [vmem:[%s6137_s1 + $0xc0c] ss:$16 sps:$4 sm:$0xff]  }
 0x20c   : > { %3960 = vmatpush1.bf16.msra.mxu1 %v5540_v3  ;;  %3920 = vmatprep.subr.bf16.mxu0 %v5545_v29  ;;  %v5614_v3 = vld [vmem:[%s6137_s1 + $0xe0c] ss:$16 sps:$4 sm:$0xff]   ;;  %v5609_v29 = vld [vmem:[%s6137_s1 + $0xc08] ss:$16 sps:$4 sm:$0xff]  }
 0x20d   : > { %3961 = vmatprep.subr.bf16.mxu1 %v5548_v32  ;;  %v3616_v52 = vpop.f32.mrb[8].mxu0  ;;  %v5612_v32 = vld [vmem:[%s6137_s1 + $0xe08] ss:$16 sps:$4 sm:$0xff]  }
 0x20e   : > { %v3657_v10 = vpop.f32.mrb[8].mxu1  ;;  %v3617_v11 = vadd.f32 %v3616_v52, %v6620_v42  ;;  %v3618_v12 = vpop.f32.mrb[9].mxu0  ;;  %v5557_v42 = vld [vmem:[%s6137_s1 + $0x8ec] ss:$16 sps:$4 sm:$0xff]  }
 0x20f   : > { %v3659_v13 = vpop.f32.mrb[9].mxu1  ;;  %v3619_v14 = vadd.f32 %v3618_v12, %v6624_v4  ;;  %v3620_v15 = vpop.f32.mrb[10].mxu0  ;;  %3921 = vmatpush1.bf16.msra.mxu0 %v5543_v5  ;;  %v5560_v4 = vld [vmem:[%s6137_s1 + $0xaec] ss:$16 sps:$4 sm:$0xff]  }
 0x210   : > { %v3661_v16 = vpop.f32.mrb[10].mxu1  ;;  %3962 = vmatpush1.bf16.msra.mxu1 %v5546_v6  ;;  %v6694_v21 = vadd.f32 %v3657_v10, %v3617_v11  ;;  %v3621_v22 = vpop.f32.mrb[11].mxu0  ;;  %3922 = vmatprep.subr.bf16.mxu0 %v5551_v48  ;;  %v5617_v5 = vld [vmem:[%s6137_s1 + $0xc2c] ss:$16 sps:$4 sm:$0xff]   ;;  %v5615_v48 = vld [vmem:[%s6137_s1 + $0xc28] ss:$16 sps:$4 sm:$0xff]  }
 0x211   : > { %v3662_v27 = vpop.f32.mrb[11].mxu1  ;;  %3963 = vmatprep.subr.bf16.mxu1 %v5554_v9  ;;  %v6698_v28 = vadd.f32 %v3659_v13, %v3619_v14  ;;  %v5620_v6 = vld [vmem:[%s6137_s1 + $0xe2c] ss:$16 sps:$4 sm:$0xff]   ;;  %v5618_v9 = vld [vmem:[%s6137_s1 + $0xe28] ss:$16 sps:$4 sm:$0xff]  }
 0x212   : > { %v5623_v52 = vld [vmem:[%s6137_s1 + $0xc4c] ss:$16 sps:$4 sm:$0xff]   ;;  %v5627_v13 = vld [vmem:[%s6137_s1 + $0xc68] ss:$16 sps:$4 sm:$0xff]  }
 0x213   : > { %3923 = vmatpush1.bf16.msra.mxu0 %v5549_v19  ;;  %v5626_v10 = vld [vmem:[%s6137_s1 + $0xe4c] ss:$16 sps:$4 sm:$0xff]   ;;  %v5633_v15 = vld [vmem:[%s6137_s1 + $0xc88] ss:$16 sps:$4 sm:$0xff]  }
 0x214   : > { %3964 = vmatpush1.bf16.msra.mxu1 %v5552_v20  ;;  %3924 = vmatprep.subr.bf16.mxu0 %v5557_v42  ;;  %v5629_v11 = vld [vmem:[%s6137_s1 + $0xc6c] ss:$16 sps:$4 sm:$0xff]   ;;  %v5636_v16 = vld [vmem:[%s6137_s1 + $0xe88] ss:$16 sps:$4 sm:$0xff]  }
 0x215   : > { %3965 = vmatprep.subr.bf16.mxu1 %v5560_v4  ;;  %v5632_v12 = vld [vmem:[%s6137_s1 + $0xe6c] ss:$16 sps:$4 sm:$0xff]   ;;  %v5639_v22 = vld [vmem:[%s6137_s1 + $0xca8] ss:$16 sps:$4 sm:$0xff]  }
 0x216   : > { %v5638_v14 = vld [vmem:[%s6137_s1 + $0xe8c] ss:$16 sps:$4 sm:$0xff]   ;;  %v5642_v27 = vld [vmem:[%s6137_s1 + $0xea8] ss:$16 sps:$4 sm:$0xff]  }
 0x217   : > { %3925 = vmatpush1.bf16.msra.mxu0 %v5555_v30  ;;  %v5641_v19 = vld [vmem:[%s6137_s1 + $0xcac] ss:$16 sps:$4 sm:$0xff]  }
 0x218   : > { %3966 = vmatpush1.bf16.msra.mxu1 %v5558_v31  ;;  %3926 = vmatprep.subr.bf16.mxu0 %v5563_v33  ;;  %v5644_v20 = vld [vmem:[%s6137_s1 + $0xeac] ss:$16 sps:$4 sm:$0xff]  }
 0x219   : > { %3967 = vmatprep.subr.bf16.mxu1 %v5566_v34  ;;  %v5647_v42 = vld [vmem:[%s6137_s1 + $0xccc] ss:$16 sps:$4 sm:$0xff]  }
 0x21a   : > { %v5650_v4 = vld [vmem:[%s6137_s1 + $0xecc] ss:$16 sps:$4 sm:$0xff]  }
 0x21b   : > { %3927 = vmatpush1.bf16.msra.mxu0 %v5561_v7 }
 0x21c   : > { %3968 = vmatpush1.bf16.msra.mxu1 %v5564_v8  ;;  %3928 = vmatprep.subr.bf16.mxu0 %v5569_v35  ;;  %v5645_v8 = vld [vmem:[%s6137_s1 + $0xcc8] ss:$16 sps:$4 sm:$0xff]  }
 0x21d   : > { %3969 = vmatprep.subr.bf16.mxu1 %v5572_v36  ;;  %v278_v35 = vld [vmem:[%s6161_s26] sm:$0xff] }
 0x21f   : > { %3929 = vmatpush1.bf16.msra.mxu0 %v5567_v43  ;;  %v279_v43 = vld [vmem:[%s6161_s26 + $0x8] sm:$0xff] }
 0x220   : > { %3970 = vmatpush1.bf16.msra.mxu1 %v5570_v37  ;;  %3930 = vmatprep.subr.bf16.mxu0 %v5575_v38 }
 0x221   : > { %3971 = vmatprep.subr.bf16.mxu1 %v5578_v44  ;;  %v5648_v44 = vld [vmem:[%s6137_s1 + $0xec8] ss:$16 sps:$4 sm:$0xff]  }
 0x223   : > { %3931 = vmatpush1.bf16.msra.mxu0 %v5573_v45 }
 0x224   : > { %3972 = vmatpush1.bf16.msra.mxu1 %v5576_v46  ;;  %3932 = vmatprep.subr.bf16.mxu0 %v5581_v47  ;;  %v5653_v47 = vld [vmem:[%s6137_s1 + $0xcec] ss:$16 sps:$4 sm:$0xff]  }
 0x225   : > { %3973 = vmatprep.subr.bf16.mxu1 %v5584_v49  ;;  %v5656_v49 = vld [vmem:[%s6137_s1 + $0xeec] ss:$16 sps:$4 sm:$0xff]  }
 0x227   : > { %3933 = vmatpush1.bf16.msra.mxu0 %v5579_v50 }
 0x228   : > { %3974 = vmatpush1.bf16.msra.mxu1 %v5582_v51  ;;  %3934 = vmatprep.subr.bf16.mxu0 %v5587_v53  ;;  %v5651_v53 = vld [vmem:[%s6137_s1 + $0xce8] ss:$16 sps:$4 sm:$0xff]  }
 0x229   : > { %3975 = vmatprep.subr.bf16.mxu1 %v5590_v54  ;;  %v5654_v54 = vld [vmem:[%s6137_s1 + $0xee8] ss:$16 sps:$4 sm:$0xff]  }
 0x22b   : > { %3935 = vmatpush1.bf16.msra.mxu0 %v5585_v55  ;;  %v5659_v55 = vld [vmem:[%s6137_s1 + $0xd0c] ss:$16 sps:$4 sm:$0xff]  }
 0x22c   : > { %3976 = vmatpush1.bf16.msra.mxu1 %v5588_v56  ;;  %3936 = vmatprep.subr.bf16.mxu0 %v5593_v57  ;;  %v5662_v56 = vld [vmem:[%s6137_s1 + $0xf0c] ss:$16 sps:$4 sm:$0xff]   ;;  %v5657_v57 = vld [vmem:[%s6137_s1 + $0xd08] ss:$16 sps:$4 sm:$0xff]  }
 0x22d   : > { %3977 = vmatprep.subr.bf16.mxu1 %v5596_v58  ;;  %v5660_v58 = vld [vmem:[%s6137_s1 + $0xf08] ss:$16 sps:$4 sm:$0xff]  }
 0x22f   : > { %3937 = vmatpush1.bf16.msra.mxu0 %v5591_v61  ;;  %v5665_v61 = vld [vmem:[%s6137_s1 + $0xd2c] ss:$16 sps:$4 sm:$0xff]  }
 0x230   : > { %3978 = vmatpush1.bf16.msra.mxu1 %v5594_v62  ;;  %3938 = vmatprep.subr.bf16.mxu0 %v5599_v17  ;;  %v5668_v62 = vld [vmem:[%s6137_s1 + $0xf2c] ss:$16 sps:$4 sm:$0xff]   ;;  %v5663_v17 = vld [vmem:[%s6137_s1 + $0xd28] ss:$16 sps:$4 sm:$0xff]  }
 0x231   : > { %3979 = vmatprep.subr.bf16.mxu1 %v5602_v18  ;;  %v5666_v18 = vld [vmem:[%s6137_s1 + $0xf28] ss:$16 sps:$4 sm:$0xff]  }
 0x233   : > { %3939 = vmatpush1.bf16.msra.mxu0 %v5597_v63  ;;  %v5671_v63 = vld [vmem:[%s6137_s1 + $0xd4c] ss:$16 sps:$4 sm:$0xff]  }
 0x234   : > { %3980 = vmatpush1.bf16.msra.mxu1 %v5600_v0  ;;  %3940 = vmatprep.subr.bf16.mxu0 %v5605_v41  ;;  %v5674_v0 = vld [vmem:[%s6137_s1 + $0xf4c] ss:$16 sps:$4 sm:$0xff]   ;;  %v5669_v41 = vld [vmem:[%s6137_s1 + $0xd48] ss:$16 sps:$4 sm:$0xff]  }
 0x235   : > { %3981 = vmatprep.subr.bf16.mxu1 %v5608_v25  ;;  %v5672_v25 = vld [vmem:[%s6137_s1 + $0xf48] ss:$16 sps:$4 sm:$0xff]  }
 0x237   : > { %3941 = vmatpush1.bf16.msra.mxu0 %v5603_v26  ;;  %v5677_v26 = vld [vmem:[%s6137_s1 + $0xd6c] ss:$16 sps:$4 sm:$0xff]  }
 0x238   : > { %3982 = vmatpush1.bf16.msra.mxu1 %v5606_v1  ;;  %3992 = vmatprep.subr.bf16.mxu0 %v5611_v2  ;;  %v5680_v1 = vld [vmem:[%s6137_s1 + $0xf6c] ss:$16 sps:$4 sm:$0xff]   ;;  %v5675_v2 = vld [vmem:[%s6137_s1 + $0xd68] ss:$16 sps:$4 sm:$0xff]  }
 0x239   : > { %4033 = vmatprep.subr.bf16.mxu1 %v5614_v3  ;;  %v5678_v3 = vld [vmem:[%s6137_s1 + $0xf68] ss:$16 sps:$4 sm:$0xff]  }
 0x23a   : > { %3943 = vmatmul.mubr.bf16.vlgmr.msra.gmra.mrb[24].mxu0 %v6422_v39  ;;  %v5621_v39 = vld [vmem:[%s6137_s1 + $0xc48] ss:$16 sps:$4 sm:$0xff]  }
 0x23b   : > { %3984 = vmatmul.mubr.bf16.vlgmr.msra.gmra.mrb[24].mxu1 %v6426_v40  ;;  %3993 = vmatpush1.bf16.msra.mxu0 %v5609_v29  ;;  %v5624_v40 = vld [vmem:[%s6137_s1 + $0xe48] ss:$16 sps:$4 sm:$0xff]   ;;  %v5683_v29 = vld [vmem:[%s6137_s1 + $0xd8c] ss:$16 sps:$4 sm:$0xff]  }
 0x23c   : > { %4034 = vmatpush1.bf16.msra.mxu1 %v5612_v32  ;;  %3994 = vmatprep.subr.bf16.mxu0 %v5617_v5  ;;  %v5686_v32 = vld [vmem:[%s6137_s1 + $0xf8c] ss:$16 sps:$4 sm:$0xff]   ;;  %v5681_v5 = vld [vmem:[%s6137_s1 + $0xd88] ss:$16 sps:$4 sm:$0xff]  }
 0x23d   : > { %4035 = vmatprep.subr.bf16.mxu1 %v5620_v6  ;;  %4024 = vmatprep.mubr.bf16.mxu0 %v6438_v23  ;;  %v5630_v23 = vld [vmem:[%s6137_s1 + $0xe68] ss:$16 sps:$4 sm:$0xff]  }
 0x23e   : > { %4065 = vmatprep.mubr.bf16.mxu1 %v6442_v24  ;;  %v5635_v24 = vld [vmem:[%s6137_s1 + $0xc8c] ss:$16 sps:$4 sm:$0xff]   ;;  %v5684_v6 = vld [vmem:[%s6137_s1 + $0xf88] ss:$16 sps:$4 sm:$0xff]  }
 0x23f   : > { %3995 = vmatpush1.bf16.msra.mxu0 %v5615_v48  ;;  %v5689_v48 = vld [vmem:[%s6137_s1 + $0xdac] ss:$16 sps:$4 sm:$0xff]  }
 0x240   : > { %4036 = vmatpush1.bf16.msra.mxu1 %v5618_v9  ;;  %3996 = vmatprep.subr.bf16.mxu0 %v5623_v52  ;;  %v5692_v9 = vld [vmem:[%s6137_s1 + $0xfac] ss:$16 sps:$4 sm:$0xff]   ;;  %v5687_v52 = vld [vmem:[%s6137_s1 + $0xda8] ss:$16 sps:$4 sm:$0xff]  }
 0x241   : > { %4037 = vmatprep.subr.bf16.mxu1 %v5626_v10  ;;  %v5690_v10 = vld [vmem:[%s6137_s1 + $0xfa8] ss:$16 sps:$4 sm:$0xff]  }
 0x243   : > { %3997 = vmatpush1.bf16.msra.mxu0 %v5621_v39  ;;  %v5695_v39 = vld [vmem:[%s6137_s1 + $0xdcc] ss:$16 sps:$4 sm:$0xff]  }
 0x244   : > { %4038 = vmatpush1.bf16.msra.mxu1 %v5624_v40  ;;  %3998 = vmatprep.subr.bf16.mxu0 %v5629_v11  ;;  %v5698_v40 = vld [vmem:[%s6137_s1 + $0xfcc] ss:$16 sps:$4 sm:$0xff]   ;;  %v5693_v11 = vld [vmem:[%s6137_s1 + $0xdc8] ss:$16 sps:$4 sm:$0xff]  }
 0x245   : > { %4039 = vmatprep.subr.bf16.mxu1 %v5632_v12  ;;  %v5696_v12 = vld [vmem:[%s6137_s1 + $0xfc8] ss:$16 sps:$4 sm:$0xff]  }
 0x247   : > { %3999 = vmatpush1.bf16.msra.mxu0 %v5627_v13  ;;  %v5701_v13 = vld [vmem:[%s6137_s1 + $0xdec] ss:$16 sps:$4 sm:$0xff]  }
 0x248   : > { %4040 = vmatpush1.bf16.msra.mxu1 %v5630_v23  ;;  %4000 = vmatprep.subr.bf16.mxu0 %v5635_v24  ;;  %v5704_v23 = vld [vmem:[%s6137_s1 + $0xfec] ss:$16 sps:$4 sm:$0xff]   ;;  %v5699_v24 = vld [vmem:[%s6137_s1 + $0xde8] ss:$16 sps:$4 sm:$0xff]  }
 0x249   : > { %4041 = vmatprep.subr.bf16.mxu1 %v5638_v14  ;;  %v5702_v14 = vld [vmem:[%s6137_s1 + $0xfe8] ss:$16 sps:$4 sm:$0xff]  }
 0x24b   : > { %4001 = vmatpush1.bf16.msra.mxu0 %v5633_v15 }
 0x24c   : > { %4042 = vmatpush1.bf16.msra.mxu1 %v5636_v16  ;;  %4002 = vmatprep.subr.bf16.mxu0 %v5641_v19 }
 0x24d   : > { %4043 = vmatprep.subr.bf16.mxu1 %v5644_v20  ;;  %v3698_v30 = vpop.f32.mrb[12].mxu0 }
 0x24e   : > { %v3739_v31 = vpop.f32.mrb[12].mxu1  ;;  %v3699_v33 = vadd.f32 %v3698_v30, %v6694_v21  ;;  %v3700_v34 = vpop.f32.mrb[13].mxu0 }
 0x24f   : > { %v3741_v7 = vpop.f32.mrb[13].mxu1  ;;  %v3701_v36 = vadd.f32 %v3700_v34, %v6698_v28  ;;  %v3702_v37 = vpop.f32.mrb[14].mxu0  ;;  %4003 = vmatpush1.bf16.msra.mxu0 %v5639_v22 }
 0x250   : > { %v3743_v38 = vpop.f32.mrb[14].mxu1  ;;  %4044 = vmatpush1.bf16.msra.mxu1 %v5642_v27  ;;  %v3740_v45 = vadd.f32 %v3739_v31, %v3699_v33  ;;  %v3703_v46 = vpop.f32.mrb[15].mxu0  ;;  %4004 = vmatprep.subr.bf16.mxu0 %v5647_v42 }
 0x251   : > { %v3744_v21 = vpop.f32.mrb[15].mxu1  ;;  %4045 = vmatprep.subr.bf16.mxu1 %v5650_v4  ;;  %v3742_v28 = vadd.f32 %v3741_v7, %v3701_v36 }
 0x252   : > { %v4074_v50 = vadd.f32 %v3740_v45, %v278_v35 }
 0x253   : > { %v4075_v51 = vadd.f32 %v3742_v28, %v279_v43  ;;  %4005 = vmatpush1.bf16.msra.mxu0 %v5645_v8 }
 0x254   : > { %4046 = vmatpush1.bf16.msra.mxu1 %v5648_v44  ;;  %4078 = vst [vmem:[%s6161_s26] sm:$0xff] %v4074_v50  ;;  %4006 = vmatprep.subr.bf16.mxu0 %v5653_v47 }
 0x255   : > { %4047 = vmatprep.subr.bf16.mxu1 %v5656_v49  ;;  %4079 = vst [vmem:[%s6161_s26 + $0x8] sm:$0xff] %v4075_v51 }
 0x257   : > { %4007 = vmatpush1.bf16.msra.mxu0 %v5651_v53 }
 0x258   : > { %4048 = vmatpush1.bf16.msra.mxu1 %v5654_v54  ;;  %4008 = vmatprep.subr.bf16.mxu0 %v5659_v55 }
 0x259   : > { %4049 = vmatprep.subr.bf16.mxu1 %v5662_v56 }
 0x25b   : > { %4009 = vmatpush1.bf16.msra.mxu0 %v5657_v57 }
 0x25c   : > { %4050 = vmatpush1.bf16.msra.mxu1 %v5660_v58  ;;  %4010 = vmatprep.subr.bf16.mxu0 %v5665_v61 }
 0x25d   : > { %4051 = vmatprep.subr.bf16.mxu1 %v5668_v62 }
 0x25f   : > { %4011 = vmatpush1.bf16.msra.mxu0 %v5663_v17 }
 0x260   : > { %4052 = vmatpush1.bf16.msra.mxu1 %v5666_v18  ;;  %4012 = vmatprep.subr.bf16.mxu0 %v5671_v63  ;;  %v280_v18 = vld [vmem:[%s6161_s26 + $0x10] sm:$0xff] }
 0x261   : > { %4053 = vmatprep.subr.bf16.mxu1 %v5674_v0 }
 0x263   : > { %4013 = vmatpush1.bf16.msra.mxu0 %v5669_v41 }
 0x264   : > { %4054 = vmatpush1.bf16.msra.mxu1 %v5672_v25  ;;  %4014 = vmatprep.subr.bf16.mxu0 %v5677_v26  ;;  %v281_v26 = vld [vmem:[%s6161_s26 + $0x18] sm:$0xff] }
 0x265   : > { %4055 = vmatprep.subr.bf16.mxu1 %v5680_v1 }
 0x267   : > { %4015 = vmatpush1.bf16.msra.mxu0 %v5675_v2 }
 0x268   : > { %4056 = vmatpush1.bf16.msra.mxu1 %v5678_v3  ;;  %4016 = vmatprep.subr.bf16.mxu0 %v5683_v29 }
 0x269   : > { %4057 = vmatprep.subr.bf16.mxu1 %v5686_v32 }
 0x26b   : > { %4017 = vmatpush1.bf16.msra.mxu0 %v5681_v5  ;;  %v4092_v5 = vlaneseq (!%p4801_p5) }
 0x26c   : > { %4058 = vmatpush1.bf16.msra.mxu1 %v5684_v6  ;;  %4018 = vmatprep.subr.bf16.mxu0 %v5689_v48  ;;  %v4090_v48 = vld [vmem:[%s6148_s4] sm:$0xf] (!%p4801_p5) }
 0x26d   : > { %4059 = vmatprep.subr.bf16.mxu1 %v5692_v9  ;;  %v4093_v6 = vshrl.u32 (!%p4801_p5), %v4092_v5, 7  ;;  %v4086_v9 = vld [vmem:[%s6161_s26] sm:$0xff] (!%p4801_p5) }
 0x26f   : > { %4019 = vmatpush1.bf16.msra.mxu0 %v5687_v52  ;;  %v4094_v52 = vsub.s32 (!%p4801_p5), 0, %v4093_v6 }
 0x270   : > { %4060 = vmatpush1.bf16.msra.mxu1 %v5690_v10  ;;  %4020 = vmatprep.subr.bf16.mxu0 %v5695_v39  ;;  %v4098_v10 = vsub.s32 (!%p4801_p5), 1, %v4093_v6  ;;  %v4102_v39 = vsub.s32 (!%p4801_p5), 2, %v4093_v6 }
 0x271   : > { %4061 = vmatprep.subr.bf16.mxu1 %v5698_v40  ;;  %v4106_v40 = vsub.s32 (!%p4801_p5), 3, %v4093_v6 }
 0x273   : > { %4021 = vmatpush1.bf16.msra.mxu0 %v5693_v11  ;;  %v4087_v11 = vld [vmem:[%s6161_s26 + $0x8] sm:$0xff] (!%p4801_p5) }
 0x274   : > { %4062 = vmatpush1.bf16.msra.mxu1 %v5696_v12  ;;  %4022 = vmatprep.subr.bf16.mxu0 %v5701_v13 }
 0x275   : > { %4063 = vmatprep.subr.bf16.mxu1 %v5704_v23  ;;  %v4095_v23 = vrot.slane (!%p4801_p5), %v4090_v48, %v4094_v52 }
 0x277   : > { %4023 = vmatpush1.bf16.msra.mxu0 %v5699_v24  ;;  %v4099_v24 = vrot.slane (!%p4801_p5), %v4090_v48, %v4098_v10 }
 0x278   : > { %4064 = vmatpush1.bf16.msra.mxu1 %v5702_v14  ;;  %v4103_v14 = vrot.slane (!%p4801_p5), %v4090_v48, %v4102_v39 }
 0x27a   : > { %4025 = vmatmul.mubr.bf16.vlgmr.msra.gmra.mrb[28].mxu0 %v6510_v59 }
 0x27b   : > { %4066 = vmatmul.mubr.bf16.vlgmr.msra.gmra.mrb[28].mxu1 %v6514_v60 }
 0x28d   : > { %v3780_v15 = vpop.f32.mrb[16].mxu0 }
 0x28e   : > { %v3821_v16 = vpop.f32.mrb[16].mxu1  ;;  %v3782_v20 = vpop.f32.mrb[17].mxu0 }
 0x28f   : > { %v3822_v19 = vadd.f32 %v3821_v16, %v3780_v15  ;;  %v3823_v22 = vpop.f32.mrb[17].mxu1  ;;  %v3784_v42 = vpop.f32.mrb[18].mxu0  ;;  %v4107_v15 = vrot.slane (!%p4801_p5), %v4090_v48, %v4106_v40  ;;  %v4112_v16 = vadd.f32 (!%p4801_p5), %v4095_v23, %v4086_v9 }
 0x290   : > { %v3824_v27 = vadd.f32 %v3823_v22, %v3782_v20  ;;  %v3825_v4 = vpop.f32.mrb[18].mxu1  ;;  %v3785_v30 = vpop.f32.mrb[19].mxu0 }
 0x291   : > { %v3826_v31 = vpop.f32.mrb[19].mxu1  ;;  %4116 = vst [vmem:[%s6161_s26] sm:$0xff] (!%p4801_p5), %v4112_v16 }
 0x2cd   : > { %v3862_v33 = vpop.f32.mrb[20].mxu0 }
 0x2ce   : > { %v3903_v34 = vpop.f32.mrb[20].mxu1  ;;  %v3863_v7 = vadd.f32 %v3862_v33, %v3822_v19  ;;  %v3864_v8 = vpop.f32.mrb[21].mxu0  ;;  %v4113_v19 = vadd.f32 (!%p4801_p5), %v4099_v24, %v4087_v11 }
 0x2cf   : > { %v3905_v35 = vpop.f32.mrb[21].mxu1  ;;  %v3865_v36 = vadd.f32 %v3864_v8, %v3824_v27  ;;  %v3866_v43 = vpop.f32.mrb[22].mxu0 }
 0x2d0   : > { %v3907_v59 = vpop.f32.mrb[22].mxu1  ;;  %v3904_v37 = vadd.f32 %v3903_v34, %v3863_v7  ;;  %v3867_v60 = vpop.f32.mrb[23].mxu0  ;;  %4117 = vst [vmem:[%s6161_s26 + $0x8] sm:$0xff] (!%p4801_p5), %v4113_v19 }
 0x2d1   : > { %v3908_v38 = vpop.f32.mrb[23].mxu1  ;;  %v3906_v44 = vadd.f32 %v3905_v35, %v3865_v36 }
 0x30d   : > { %v3944_v45 = vpop.f32.mrb[24].mxu0 }
 0x30e   : > { %v3985_v46 = vpop.f32.mrb[24].mxu1  ;;  %v3945_v21 = vadd.f32 %v3944_v45, %v3904_v37  ;;  %v3946_v47 = vpop.f32.mrb[25].mxu0 }
 0x30f   : > { %v3987_v49 = vpop.f32.mrb[25].mxu1  ;;  %v3947_v28 = vadd.f32 %v3946_v47, %v3906_v44  ;;  %v3948_v50 = vpop.f32.mrb[26].mxu0 }
 0x310   : > { %v3989_v51 = vpop.f32.mrb[26].mxu1  ;;  %v3986_v53 = vadd.f32 %v3985_v46, %v3945_v21  ;;  %v3949_v54 = vpop.f32.mrb[27].mxu0 }
 0x311   : > { %v3990_v55 = vpop.f32.mrb[27].mxu1  ;;  %v3988_v56 = vadd.f32 %v3987_v49, %v3947_v28 }
 0x34d   : > { %v4026_v57 = vpop.f32.mrb[28].mxu0 }
 0x34e   : > { %v4067_v58 = vpop.f32.mrb[28].mxu1  ;;  %v4027_v61 = vadd.f32 %v4026_v57, %v3986_v53  ;;  %v4028_v62 = vpop.f32.mrb[29].mxu0 }
 0x34f   : > { %v4069_v17 = vpop.f32.mrb[29].mxu1  ;;  %v4029_v63 = vadd.f32 %v4028_v62, %v3988_v56  ;;  %v4030_v0 = vpop.f32.mrb[30].mxu0  ;;  %4085 = sbr.rel (%p4801_p5) target bundleno = 864 (0x360), region = 48 }
 0x350   : > { %v4071_v41 = vpop.f32.mrb[30].mxu1  ;;  %v4068_v25 = vadd.f32 %v4067_v58, %v4027_v61  ;;  %v4031_v1 = vpop.f32.mrb[31].mxu0 }
 0x351   : > { %v4072_v2 = vpop.f32.mrb[31].mxu1  ;;  %v4070_v3 = vadd.f32 %v4069_v17, %v4029_v63 }
 0x352   : > { %v4076_v29 = vadd.f32 %v4068_v25, %v280_v18 }
 0x353   : > { %v4077_v32 = vadd.f32 %v4070_v3, %v281_v26 }
 0x354   : > { %4080 = vst [vmem:[%s6161_s26 + $0x10] sm:$0xff] %v4076_v29 }
 0x355   : > { %4081 = vst [vmem:[%s6161_s26 + $0x18] sm:$0xff] %v4077_v32 }
 0x35b   : > { %v4088_v12 = vld [vmem:[%s6161_s26 + $0x10] sm:$0xff] }
 0x35c   : > { %v4089_v13 = vld [vmem:[%s6161_s26 + $0x18] sm:$0xff]  ;;  %v4114_v20 = vadd.f32 %v4103_v14, %v4088_v12 }
 0x35d   : > { %v4115_v22 = vadd.f32 %v4107_v15, %v4089_v13 }
 0x35e   : > { %4118 = vst [vmem:[%s6161_s26 + $0x10] sm:$0xff] %v4114_v20 }
 0x35f   : > { %4119 = vst [vmem:[%s6161_s26 + $0x18] sm:$0xff] %v4115_v22 }
 0x360 PF: > { %s4809_s18 = sshll.u32 %s5879_s19, 9  ;;  %s4135_s5 = sshll.u32 %s6161_s26, 4  ;;  %s4136_s5 = int_to_ptr.vmem [resolvable:$true] %s4135_s5 }
 0x361   : > { %s6828_s1 = scalar_lea.hbm %s6889_s3, %s4809_s18  ;;  %s4121_s11 = scalar_lea.sflag [#allocation4], %s6144_s25 }
 0x362   : > { %s5765_s4 = scalar_lea.vmem %s4136_s5, 512  ;;  %p6914_p9 = scmp.ne.s32.totalorder %s6907_s9, 0 }
 0x363   : > { %p5766_p0 = scmp.ne.s32.totalorder %s4136_s5, %s5765_s4  ;;  %s5899_s7 = smov [#allocation7]  }
 0x364   : > { %s5769_s10 = sshll.u32 %s5899_s7, 4  ;;  %s5770_s10 = int_to_ptr.vmem [resolvable:$false] %s5769_s10 }
 0x365   : > { %p5767_p12 = pnand %p5766_p0, %p6914_p9  ;;  %s5771_s29 = scalar_lea.vmem %s5770_s10, 1024 }
 0x366   : > { %p5772_p3 = scmp.lt.s32.totalorder %s4136_s5, %s5770_s10  ;;  %p5773_p11 = scmp.lt.s32.totalorder %s5771_s29, %s5765_s4 }
 0x367   : > { %p5768_p10 = pneg %p5767_p12 }
 0x368   : > { %p5774_p2 = por %p5773_p11, %p5772_p3 }
 0x36a   : > { %p5775_p4 = pnand %p5774_p2, %p5768_p10 }
 0x36c   : > { %5778 = shalt.err (!%p5775_p4)
}
 0x36d   : > { %s5779_s19 = scalar_lea.hbm %s6828_s1, 512  ;;  %s5783_s23 = scalar_lea.hbm %s6889_s3, 1024 }
 0x36e   : > { %p5780_p8 = scmp.ne.s32.totalorder %s6828_s1, %s5779_s19  ;;  %p5784_p1 = scmp.lt.u32.totalorder %s6828_s1, %s6889_s3 }
 0x36f   : > { %p5785_p7 = scmp.lt.u32.totalorder %s5783_s23, %s5779_s19  ;;  %p5787_p0 = scmp.lt.u32.totalorder %s5779_s19, %s6828_s1 }
 0x370   : > { %p5781_p13 = pnand %p5780_p8, %p6914_p9 }
 0x371   : > { %p5786_p5 = por %p5785_p7, %p5784_p1 }
 0x372   : > { %p5782_p6 = pneg %p5781_p13 }
 0x373   : > { %p5788_p12 = por %p5787_p0, %p5786_p5 }
 0x375   : > { %p5789_p10 = pnand %p5788_p12, %p5782_p6 }
 0x377   : > { %5792 = shalt.err (!%p5789_p10)
}
 0x378   : > { %4814 = dma.vmem_to_hbm [thread:$0]  (%p6914_p9), %s4136_s5, 512, %s6828_s1, %s4121_s11  }
 0x379 PF: > { %p4828_p3 = scmp.ge.s32.totalorder %s5891_s22, 2  ;;  %s4147_s18 = sand.u32 1, %s5851_s12  }
 0x37a   : > { %p6915_p11 = scmp.ne.s32.totalorder %s6909_s6, 0  ;;  %s4148_s15 = scalar_lea.sflag [#allocation4], %s4147_s18 }
 0x37c   : > { %p4824_p2 = pnand %p4828_p3, %p6915_p11 }
 0x37e   : > { %5846 = dma.done.wait (!%p4824_p2), %s4148_s15, 512  }
 0x37f   : > { %5848 = vsyncadd (!%p4824_p2), %s4148_s15, 4294966784  ;;  %s22_s22 = sadd.s32 1, %s5891_s22   ;;  %s6916_s9 = sld [smem:[#allocation11_spill]] }
 0x380   : > { %p19_p4 = scmp.ge.s32.totalorder %s22_s22, 6   ;;  %s6917_s24 = sld [smem:[#allocation12_spill]] }
 0x381   : > { %s6918_s12 = smov %s5855_s13  ;;  %s6919_s13 = smov %s5859_s14 }
 0x382   : > { %s6920_s14 = smov %s6078_s28  ;;  %s6921_s15 = smov %s5867_s16 }
 0x383   : > { %s6922_s16 = smov %s5871_s17  ;;  %s6923_s17 = smov %s6083_s27 }
 0x384   : > { %s6924_s18 = smov %s5883_s20  ;;  %s6925_s19 = smov %s5887_s21 }
 0x385   : > { %s6926_s20 = smov %s6916_s9  ;;  %21 = sbr.rel (!%p19_p4) target bundleno = 13 (0xd), region = 101 }
 0x386   : > { %s6927_s21 = smov %s6917_s24 }
 0x38c   :  { %4153 = vsyncpa [#allocation3], 1 }
 0x38d   :  { %4155 = vsyncpa [#allocation3 + $0x1], 1 }
 0x38e   :  { %4156 = vsyncpa [#allocation6], 1 }
 0x38f   :  { %4158 = vsyncpa [#allocation6 + $0x1], 1 }
 0x390   :  { %4159 = vsyncpa [#allocation4], 1 }
 0x391   :  { %4161 = vsyncpa [#allocation4 + $0x1], 1 }

</bundles_post_ra>
